<compile_context>
chip_gen: v7x
topology: tpu7x:2x2x1
jax: 0.10.0
libtpu: 0.0.40
codegen_flags: <defaults>
</compile_context>

<pallas_src>
import functools

import jax
import jax.numpy as jnp
from jax.experimental import pallas as pl
from jax.experimental.pallas import tpu as pltpu


def _round_up(x, m):
    return ((x + m - 1) // m) * m


def _pose_classifier_kernel(
    tokens_ref,   # (T*Bp, L*C) bf16  flattened frame tokens, rows (t, b) order
    posb_ref,     # (T*Bp, D)   f32   pooled positional embedding + encoder bias
    w_enc_ref,    # (L*C, D)    bf16  pooled encoder projection (mean folded in)
    wi_f_ref,     # (D, GW)     bf16  fwd input->gates, blocks [r|z|n] at GP pitch
    wh_f_ref,     # (H, GW)     bf16  fwd hidden->gates
    bi_f_ref,     # (1, GW)     f32   fwd gate bias (b_ih, + b_hh folded for r,z)
    bhn_f_ref,    # (1, H)      f32   fwd hidden bias of the n gate (kept separate)
    wi_b_ref,     # (D, GW)     bf16  backward direction
    wh_b_ref,     # (H, GW)     bf16
    bi_b_ref,     # (1, GW)     f32
    bhn_b_ref,    # (1, H)      f32
    w_cls_f_ref,  # (H, NCp)    bf16  classifier weights acting on the forward half
    w_cls_b_ref,  # (H, NCp)    bf16  classifier weights acting on the backward half
    b_cls_ref,    # (1, NCp)    f32
    out_ref,      # (T*Bp, NCp) f32
    gx_f_ref,     # scratch (T*Bp, GW) f32  precomputed fwd input-gate projections
    gx_b_ref,     # scratch (T*Bp, GW) f32  precomputed bwd input-gate projections
    hf_ref,       # scratch (T*Bp, H)  f32  forward GRU outputs
    hb_ref,       # scratch (T*Bp, H)  f32  backward GRU outputs
    *,
    batch_pad: int,
    seq: int,
    hidden: int,
    gate_pitch: int,
):
    Bp, T, H, GP = batch_pad, seq, hidden, gate_pitch
    bf16 = jnp.bfloat16

    # ---- encoder (synthetic frozen stand-in, see TODO above) ---------------
    # Landmark mean-pool is folded into the projection weight, so this is one
    # batched matmul + the pooled positional embedding / bias.
    frame = (
        jnp.dot(tokens_ref[...], w_enc_ref[...],
                preferred_element_type=jnp.float32)
        + posb_ref[...]
    )                                                            # (T*Bp, D) f32
    frame_bf = frame.astype(bf16)

    # ---- input-side gate projections for ALL timesteps (off the serial
    # ---- recurrence chain), one fused matmul per direction -----------------
    gx_f_ref[...] = (
        jnp.dot(frame_bf, wi_f_ref[...], preferred_element_type=jnp.float32)
        + bi_f_ref[...]
    )
    gx_b_ref[...] = (
        jnp.dot(frame_bf, wi_b_ref[...], preferred_element_type=jnp.float32)
        + bi_b_ref[...]
    )

    wh_f = wh_f_ref[...]
    wh_b = wh_b_ref[...]
    bhn_f = bhn_f_ref[...]
    bhn_b = bhn_b_ref[...]

    def sigmoid(x):
        # sigmoid(x) == 0.5 + 0.5 * tanh(0.5 * x): single EUP op + FMA.
        return 0.5 + 0.5 * jnp.tanh(0.5 * x)

    def gru_step(h_prev, t, gx_ref, wh, bhn):
        # Per-step block is (Bp=8, GW=128): sublane-aligned rows, one vreg of
        # gx and one MXU column tile of gh. Gate slices sit at static lane
        # offsets 0 / GP / 2*GP.
        r0 = t * Bp
        gx = gx_ref[r0:r0 + Bp, :]                                 # (Bp, GW)
        gh = jnp.dot(h_prev.astype(bf16), wh,
                     preferred_element_type=jnp.float32)           # (Bp, GW)
        r = sigmoid(gx[:, 0:H] + gh[:, 0:H])
        z = sigmoid(gx[:, GP:GP + H] + gh[:, GP:GP + H])
        n = jnp.tanh(gx[:, 2 * GP:2 * GP + H]
                     + r * (gh[:, 2 * GP:2 * GP + H] + bhn))
        return (1.0 - z) * n + z * h_prev

    # ---- bidirectional recurrence: hidden states carried in vregs, the two
    # ---- independent chains interleaved, loop fully unrolled (T static) ----
    h_f = jnp.zeros((Bp, H), jnp.float32)
    h_b = jnp.zeros((Bp, H), jnp.float32)
    for s in range(T):
        tf = s
        tb = T - 1 - s
        h_f = gru_step(h_f, tf, gx_f_ref, wh_f, bhn_f)
        h_b = gru_step(h_b, tb, gx_b_ref, wh_b, bhn_b)
        hf_ref[tf * Bp:(tf + 1) * Bp, :] = h_f
        hb_ref[tb * Bp:(tb + 1) * Bp, :] = h_b

    # ---- classifier head, batched over all timesteps, one lane-dense store
    # ---- (dropout is the identity at inference) ----------------------------
    out_ref[...] = (
        jnp.dot(hf_ref[...].astype(bf16), w_cls_f_ref[...],
                preferred_element_type=jnp.float32)
        + jnp.dot(hb_ref[...].astype(bf16), w_cls_b_ref[...],
                  preferred_element_type=jnp.float32)
        + b_cls_ref[...]
    )


def _pack_gru_direction(w_ih, w_hh, b_ih, b_hh, H, GP, GW):
    """Pack PyTorch-layout GRU weights (gate order r, z, n) into fused
    matrices with each gate block at lane pitch GP inside a GW-lane slab;
    fold b_hh for the r and z gates into the input-side bias (the n-gate b_hh
    must stay separate, it is multiplied by r inside the cell). Weight
    matrices are returned in bf16 (MXU operands), biases in f32."""
    D = w_ih.shape[1]
    wi = jnp.zeros((D, GW), jnp.float32)
    wh = jnp.zeros((H, GW), jnp.float32)
    bi = jnp.zeros((1, GW), jnp.float32)
    for g in range(3):
        wi = wi.at[:, g * GP:g * GP + H].set(w_ih[g * H:(g + 1) * H, :].T)
        wh = wh.at[:, g * GP:g * GP + H].set(w_hh[g * H:(g + 1) * H, :].T)
    bi = bi.at[0, 0 * GP:0 * GP + H].set(b_ih[0 * H:1 * H] + b_hh[0 * H:1 * H])
    bi = bi.at[0, 1 * GP:1 * GP + H].set(b_ih[1 * H:2 * H] + b_hh[1 * H:2 * H])
    bi = bi.at[0, 2 * GP:2 * GP + H].set(b_ih[2 * H:3 * H])
    bhn = b_hh[2 * H:3 * H].reshape(1, H)
    return wi.astype(jnp.bfloat16), wh.astype(jnp.bfloat16), bi, bhn


def init_params(key, *, C, D, H, T, L, num_classes):
    """Deterministic synthetic parameters in PyTorch-like raw layout."""
    ks = jax.random.split(key, 12)
    f32 = jnp.float32
    s = 0.1
    p = {
        # synthetic frozen encoder (stand-in for the external `encoder`)
        "w_enc": s * jax.random.normal(ks[0], (C, D), f32),
        "b_enc": s * jax.random.normal(ks[1], (1, D), f32),
        "pos_emb": s * jax.random.normal(ks[2], (T * L, D), f32),
        # bidirectional GRU (input D, hidden H = D // 2), gate order r, z, n
        "w_ih_f": s * jax.random.normal(ks[3], (3 * H, D), f32),
        "w_hh_f": s * jax.random.normal(ks[4], (3 * H, H), f32),
        "b_ih_f": s * jax.random.normal(ks[5], (3 * H,), f32),
        "b_hh_f": s * jax.random.normal(ks[6], (3 * H,), f32),
        "w_ih_b": s * jax.random.normal(ks[7], (3 * H, D), f32),
        "w_hh_b": s * jax.random.normal(ks[8], (3 * H, H), f32),
        "b_ih_b": s * jax.random.normal(ks[9], (3 * H,), f32),
        "b_hh_b": s * jax.random.normal(ks[10], (3 * H,), f32),
    }
    kc1, kc2 = jax.random.split(ks[11])
    p["w_cls"] = s * jax.random.normal(kc1, (num_classes, 2 * H), f32)
    p["b_cls"] = s * jax.random.normal(kc2, (num_classes,), f32)
    return p


def pose_classifier_forward(x, params, *, num_classes):
    """x: (B, T, L, C) float32 -> logits (B, T, num_classes)."""
    B, T, L, C = x.shape
    D = params["w_enc"].shape[1]
    H = params["w_hh_f"].shape[1]
    NC = num_classes

    Bp = _round_up(B, 8)                 # sublane-aligned per-timestep block
    GP = _round_up(H, 8)                 # compact gate pitch
    GW = _round_up(3 * GP, 128)          # fused gate width (lane-dense)
    NCp = _round_up(NC, 128)             # lane-dense classifier output

    # Layout plumbing only: rows in (t, b) order, batch zero-padded to Bp,
    # each frame's L*C features flattened so the mean-pool folds into the
    # encoder matmul.
    tok = jnp.transpose(x, (1, 0, 2, 3)).reshape(T, B, L * C)
    tok = jnp.pad(tok, ((0, 0), (0, Bp - B), (0, 0)))
    tokens_flat = tok.reshape(T * Bp, L * C).astype(jnp.bfloat16)

    # Pooled encoder weight: mean_l(tok_l @ W) == tok_flat @ vstack(W / L).
    w_enc_pool = (jnp.tile(params["w_enc"], (L, 1)) / L).astype(jnp.bfloat16)

    # Positional-embedding gather (idx == arange -> identity) pooled over L,
    # plus the encoder bias, broadcast over the padded batch -> (T*Bp, D).
    pos_pooled = params["pos_emb"].reshape(T, L, D).mean(axis=1) + params["b_enc"]
    posb = jnp.broadcast_to(pos_pooled[:, None, :], (T, Bp, D)).reshape(T * Bp, D)

    wi_f, wh_f, bi_f, bhn_f = _pack_gru_direction(
        params["w_ih_f"], params["w_hh_f"], params["b_ih_f"], params["b_hh_f"],
        H, GP, GW)
    wi_b, wh_b, bi_b, bhn_b = _pack_gru_direction(
        params["w_ih_b"], params["w_hh_b"], params["b_ih_b"], params["b_hh_b"],
        H, GP, GW)

    w_cls_f = (jnp.zeros((H, NCp), jnp.float32)
               .at[:, :NC].set(params["w_cls"][:, :H].T)).astype(jnp.bfloat16)
    w_cls_b = (jnp.zeros((H, NCp), jnp.float32)
               .at[:, :NC].set(params["w_cls"][:, H:].T)).astype(jnp.bfloat16)
    b_cls = jnp.zeros((1, NCp), jnp.float32).at[0, :NC].set(params["b_cls"])

    vmem = pl.BlockSpec(memory_space=pltpu.MemorySpace.VMEM)
    args = (tokens_flat, posb, w_enc_pool,
            wi_f, wh_f, bi_f, bhn_f,
            wi_b, wh_b, bi_b, bhn_b,
            w_cls_f, w_cls_b, b_cls)

    kernel = functools.partial(_pose_classifier_kernel,
                               batch_pad=Bp, seq=T, hidden=H, gate_pitch=GP)
    logits_flat = pl.pallas_call(
        kernel,
        out_shape=jax.ShapeDtypeStruct((T * Bp, NCp), jnp.float32),
        in_specs=[vmem] * len(args),
        out_specs=vmem,
        scratch_shapes=[
            pltpu.VMEM((T * Bp, GW), jnp.float32),   # fwd input-gate proj
            pltpu.VMEM((T * Bp, GW), jnp.float32),   # bwd input-gate proj
            pltpu.VMEM((T * Bp, H), jnp.float32),    # forward GRU outputs
            pltpu.VMEM((T * Bp, H), jnp.float32),    # backward GRU outputs
        ],
    )(*args)

    logits = logits_flat.reshape(T, Bp, NCp)[:, :B, :NC]
    return jnp.transpose(logits, (1, 0, 2))


def pose_classifier_reference(x, params, *, num_classes):
    """Pure-JAX reference mirroring the PyTorch forward (for sanity check)."""
    B, T, L, C = x.shape
    D = params["w_enc"].shape[1]
    H = params["w_hh_f"].shape[1]
    tokens = x.reshape(B, T * L, C)
    emb = tokens @ params["w_enc"] + params["b_enc"] + params["pos_emb"]
    frame = emb.reshape(B, T, L, D).mean(axis=2)            # (B, T, D)
    seq = jnp.transpose(frame, (1, 0, 2))                   # (T, B, D)

    def gru_dir(xs, w_ih, w_hh, b_ih, b_hh):
        def step(h, x_t):
            r = jax.nn.sigmoid(x_t @ w_ih[:H].T + b_ih[:H]
                               + h @ w_hh[:H].T + b_hh[:H])
            z = jax.nn.sigmoid(x_t @ w_ih[H:2 * H].T + b_ih[H:2 * H]
                               + h @ w_hh[H:2 * H].T + b_hh[H:2 * H])
            n = jnp.tanh(x_t @ w_ih[2 * H:].T + b_ih[2 * H:]
                         + r * (h @ w_hh[2 * H:].T + b_hh[2 * H:]))
            h_new = (1.0 - z) * n + z * h
            return h_new, h_new
        h0 = jnp.zeros((xs.shape[1], H), jnp.float32)
        _, hs = jax.lax.scan(step, h0, xs)
        return hs

    hf = gru_dir(seq, params["w_ih_f"], params["w_hh_f"],
                 params["b_ih_f"], params["b_hh_f"])
    hb = gru_dir(seq[::-1], params["w_ih_b"], params["w_hh_b"],
                 params["b_ih_b"], params["b_hh_b"])[::-1]
    h_cat = jnp.concatenate([hf, hb], axis=-1)              # (T, B, 2H)
    logits = h_cat @ params["w_cls"].T + params["b_cls"]
    return jnp.transpose(logits, (1, 0, 2))                 # (B, T, NC)


if __name__ == "__main__":
    # Pose sequence of T frames, L landmarks with C coordinates each;
    # time_dim (= frame embedding dim) D, GRU hidden H = D // 2.
    B, T, L, C = 2, 8, 4, 3
    D = 32
    H = D // 2
    NUM_CLASSES = 5

    key = jax.random.PRNGKey(0)
    k_x, k_p = jax.random.split(key)
    x = jax.random.normal(k_x, (B, T, L, C), jnp.float32)
    params = init_params(k_p, C=C, D=D, H=H, T=T, L=L,
                         num_classes=NUM_CLASSES)

    out = pose_classifier_forward(x, params, num_classes=NUM_CLASSES)
    out = jax.block_until_ready(out)
    assert out.shape == (B, T, NUM_CLASSES)

    ref = pose_classifier_reference(x, params, num_classes=NUM_CLASSES)
    ref = jax.block_until_ready(ref)
    # Kernel matmuls use explicit bf16 operands with f32 accumulation — the
    # same numeric class as default-precision f32 TPU matmuls in the
    # reference — so a ~1e-2 tolerance covers the T-step recurrence.
    if not jnp.allclose(out, ref, atol=1e-2, rtol=1e-2):
        raise AssertionError(
            f"kernel/reference mismatch, max abs diff "
            f"{float(jnp.max(jnp.abs(out - ref)))}")

    print("KERNEL_OK")
</pallas_src>

<mosaic_0001>
module attributes {stable_mosaic.version = 11 : i64} {
  func.func @_pose_classifier_kernel(%arg0: memref<64x12xbf16, #tpu.memory_space<vmem>>, %arg1: memref<64x32xf32, #tpu.memory_space<vmem>>, %arg2: memref<12x32xbf16, #tpu.memory_space<vmem>>, %arg3: memref<32x128xbf16, #tpu.memory_space<vmem>>, %arg4: memref<16x128xbf16, #tpu.memory_space<vmem>>, %arg5: memref<1x128xf32, #tpu.memory_space<vmem>>, %arg6: memref<1x16xf32, #tpu.memory_space<vmem>>, %arg7: memref<32x128xbf16, #tpu.memory_space<vmem>>, %arg8: memref<16x128xbf16, #tpu.memory_space<vmem>>, %arg9: memref<1x128xf32, #tpu.memory_space<vmem>>, %arg10: memref<1x16xf32, #tpu.memory_space<vmem>>, %arg11: memref<16x128xbf16, #tpu.memory_space<vmem>>, %arg12: memref<16x128xbf16, #tpu.memory_space<vmem>>, %arg13: memref<1x128xf32, #tpu.memory_space<vmem>>, %arg14: memref<64x128xf32, #tpu.memory_space<vmem>>, %arg15: memref<64x128xf32, #tpu.memory_space<vmem>>, %arg16: memref<64x128xf32, #tpu.memory_space<vmem>>, %arg17: memref<64x16xf32, #tpu.memory_space<vmem>>, %arg18: memref<64x16xf32, #tpu.memory_space<vmem>>) attributes {dimension_semantics = [], scalar_prefetch = 0 : i64, scratch_operands = 4 : i64, tpu.core_type = #tpu.core_type<tc>} {
    %c0 = arith.constant 0 : index
    %c0_0 = arith.constant 0 : index
    %0 = vector.load %arg0[%c0, %c0_0] : memref<64x12xbf16, #tpu.memory_space<vmem>>, vector<64x12xbf16>
    %c0_1 = arith.constant 0 : index
    %c0_2 = arith.constant 0 : index
    %1 = vector.load %arg2[%c0_1, %c0_2] : memref<12x32xbf16, #tpu.memory_space<vmem>>, vector<12x32xbf16>
    %cst = arith.constant dense<0.000000e+00> : vector<64x32xf32>
    %2 = tpu.matmul %0, %1, %cst {dimension_numbers = #tpu.dot_dimension_numbers<[1], [0], [0], [1], [0, 0, 1, 1], [], []>} : vector<64x12xbf16>, vector<12x32xbf16>, vector<64x32xf32> -> vector<64x32xf32>
    %c0_3 = arith.constant 0 : index
    %c0_4 = arith.constant 0 : index
    %3 = vector.load %arg1[%c0_3, %c0_4] : memref<64x32xf32, #tpu.memory_space<vmem>>, vector<64x32xf32>
    %4 = arith.addf %2, %3 : vector<64x32xf32>
    %5 = arith.truncf %4 : vector<64x32xf32> to vector<64x32xbf16>
    %c0_5 = arith.constant 0 : index
    %c0_6 = arith.constant 0 : index
    %6 = vector.load %arg3[%c0_5, %c0_6] : memref<32x128xbf16, #tpu.memory_space<vmem>>, vector<32x128xbf16>
    %cst_7 = arith.constant dense<0.000000e+00> : vector<64x128xf32>
    %7 = tpu.matmul %5, %6, %cst_7 {dimension_numbers = #tpu.dot_dimension_numbers<[1], [0], [0], [1], [0, 0, 1, 1], [], []>} : vector<64x32xbf16>, vector<32x128xbf16>, vector<64x128xf32> -> vector<64x128xf32>
    %c0_8 = arith.constant 0 : index
    %c0_9 = arith.constant 0 : index
    %8 = vector.load %arg5[%c0_8, %c0_9] : memref<1x128xf32, #tpu.memory_space<vmem>>, vector<1x128xf32>
    %9 = vector.broadcast %8 : vector<1x128xf32> to vector<64x128xf32>
    %10 = arith.addf %7, %9 : vector<64x128xf32>
    %c0_10 = arith.constant 0 : index
    %c0_11 = arith.constant 0 : index
    %11 = vector.load %arg15[%c0_10, %c0_11] : memref<64x128xf32, #tpu.memory_space<vmem>>, vector<64x128xf32>
    tpu.vector_store %arg15[%c0_10, %c0_11], %10 {strides = array<i32>} : memref<64x128xf32, #tpu.memory_space<vmem>>, vector<64x128xf32>,
    %c0_12 = arith.constant 0 : index
    %c0_13 = arith.constant 0 : index
    %12 = vector.load %arg7[%c0_12, %c0_13] : memref<32x128xbf16, #tpu.memory_space<vmem>>, vector<32x128xbf16>
    %cst_14 = arith.constant dense<0.000000e+00> : vector<64x128xf32>
    %13 = tpu.matmul %5, %12, %cst_14 {dimension_numbers = #tpu.dot_dimension_numbers<[1], [0], [0], [1], [0, 0, 1, 1], [], []>} : vector<64x32xbf16>, vector<32x128xbf16>, vector<64x128xf32> -> vector<64x128xf32>
    %c0_15 = arith.constant 0 : index
    %c0_16 = arith.constant 0 : index
    %14 = vector.load %arg9[%c0_15, %c0_16] : memref<1x128xf32, #tpu.memory_space<vmem>>, vector<1x128xf32>
    %15 = vector.broadcast %14 : vector<1x128xf32> to vector<64x128xf32>
    %16 = arith.addf %13, %15 : vector<64x128xf32>
    %c0_17 = arith.constant 0 : index
    %c0_18 = arith.constant 0 : index
    %17 = vector.load %arg16[%c0_17, %c0_18] : memref<64x128xf32, #tpu.memory_space<vmem>>, vector<64x128xf32>
    tpu.vector_store %arg16[%c0_17, %c0_18], %16 {strides = array<i32>} : memref<64x128xf32, #tpu.memory_space<vmem>>, vector<64x128xf32>,
    %c0_19 = arith.constant 0 : index
    %c0_20 = arith.constant 0 : index
    %18 = vector.load %arg4[%c0_19, %c0_20] : memref<16x128xbf16, #tpu.memory_space<vmem>>, vector<16x128xbf16>
    %c0_21 = arith.constant 0 : index
    %c0_22 = arith.constant 0 : index
    %19 = vector.load %arg8[%c0_21, %c0_22] : memref<16x128xbf16, #tpu.memory_space<vmem>>, vector<16x128xbf16>
    %c0_23 = arith.constant 0 : index
    %c0_24 = arith.constant 0 : index
    %20 = vector.load %arg6[%c0_23, %c0_24] : memref<1x16xf32, #tpu.memory_space<vmem>>, vector<1x16xf32>
    %c0_25 = arith.constant 0 : index
    %c0_26 = arith.constant 0 : index
    %21 = vector.load %arg10[%c0_25, %c0_26] : memref<1x16xf32, #tpu.memory_space<vmem>>, vector<1x16xf32>
    %cst_27 = arith.constant 0.000000e+00 : f32
    %22 = vector.broadcast %cst_27 : f32 to vector<8x16xf32>
    %cst_28 = arith.constant 0.000000e+00 : f32
    %23 = vector.broadcast %cst_28 : f32 to vector<8x16xf32>
    %c0_29 = arith.constant 0 : index
    %c0_30 = arith.constant 0 : index
    %24 = vector.load %arg15[%c0_29, %c0_30] : memref<64x128xf32, #tpu.memory_space<vmem>>, vector<8x128xf32>
    %25 = arith.truncf %22 : vector<8x16xf32> to vector<8x16xbf16>
    %cst_31 = arith.constant dense<0.000000e+00> : vector<8x128xf32>
    %26 = tpu.matmul %25, %18, %cst_31 {dimension_numbers = #tpu.dot_dimension_numbers<[1], [0], [0], [1], [0, 0, 1, 1], [], []>} : vector<8x16xbf16>, vector<16x128xbf16>, vector<8x128xf32> -> vector<8x128xf32>
    %27 = vector.extract_strided_slice %24 {offsets = [0, 0], sizes = [8, 16], strides = [1, 1]} : vector<8x128xf32> to vector<8x16xf32>
    %28 = vector.extract_strided_slice %26 {offsets = [0, 0], sizes = [8, 16], strides = [1, 1]} : vector<8x128xf32> to vector<8x16xf32>
    %29 = arith.addf %27, %28 : vector<8x16xf32>
    %cst_32 = arith.constant 5.000000e-01 : f32
    %30 = vector.broadcast %cst_32 : f32 to vector<8x16xf32>
    %31 = arith.mulf %30, %29 : vector<8x16xf32>
    %32 = math.tanh %31 : vector<8x16xf32>
    %cst_33 = arith.constant 5.000000e-01 : f32
    %33 = vector.broadcast %cst_33 : f32 to vector<8x16xf32>
    %34 = arith.mulf %33, %32 : vector<8x16xf32>
    %cst_34 = arith.constant 5.000000e-01 : f32
    %35 = vector.broadcast %cst_34 : f32 to vector<8x16xf32>
    %36 = arith.addf %35, %34 : vector<8x16xf32>
    %37 = vector.extract_strided_slice %24 {offsets = [0, 16], sizes = [8, 16], strides = [1, 1]} : vector<8x128xf32> to vector<8x16xf32>
    %38 = vector.extract_strided_slice %26 {offsets = [0, 16], sizes = [8, 16], strides = [1, 1]} : vector<8x128xf32> to vector<8x16xf32>
    %39 = arith.addf %37, %38 : vector<8x16xf32>
    %cst_35 = arith.constant 5.000000e-01 : f32
    %40 = vector.broadcast %cst_35 : f32 to vector<8x16xf32>
    %41 = arith.mulf %40, %39 : vector<8x16xf32>
    %42 = math.tanh %41 : vector<8x16xf32>
    %cst_36 = arith.constant 5.000000e-01 : f32
    %43 = vector.broadcast %cst_36 : f32 to vector<8x16xf32>
    %44 = arith.mulf %43, %42 : vector<8x16xf32>
    %cst_37 = arith.constant 5.000000e-01 : f32
    %45 = vector.broadcast %cst_37 : f32 to vector<8x16xf32>
    %46 = arith.addf %45, %44 : vector<8x16xf32>
    %47 = vector.extract_strided_slice %24 {offsets = [0, 32], sizes = [8, 16], strides = [1, 1]} : vector<8x128xf32> to vector<8x16xf32>
    %48 = vector.extract_strided_slice %26 {offsets = [0, 32], sizes = [8, 16], strides = [1, 1]} : vector<8x128xf32> to vector<8x16xf32>
    %49 = vector.broadcast %20 : vector<1x16xf32> to vector<8x16xf32>
    %50 = arith.addf %48, %49 : vector<8x16xf32>
    %51 = arith.mulf %36, %50 : vector<8x16xf32>
    %52 = arith.addf %47, %51 : vector<8x16xf32>
    %53 = math.tanh %52 : vector<8x16xf32>
    %cst_38 = arith.constant 1.000000e+00 : f32
    %54 = vector.broadcast %cst_38 : f32 to vector<8x16xf32>
    %55 = arith.subf %54, %46 : vector<8x16xf32>
    %56 = arith.mulf %55, %53 : vector<8x16xf32>
    %57 = arith.mulf %46, %22 : vector<8x16xf32>
    %58 = arith.addf %56, %57 : vector<8x16xf32>
    %c56 = arith.constant 56 : index
    %c0_39 = arith.constant 0 : index
    %59 = vector.load %arg16[%c56, %c0_39] : memref<64x128xf32, #tpu.memory_space<vmem>>, vector<8x128xf32>
    %60 = arith.truncf %23 : vector<8x16xf32> to vector<8x16xbf16>
    %cst_40 = arith.constant dense<0.000000e+00> : vector<8x128xf32>
    %61 = tpu.matmul %60, %19, %cst_40 {dimension_numbers = #tpu.dot_dimension_numbers<[1], [0], [0], [1], [0, 0, 1, 1], [], []>} : vector<8x16xbf16>, vector<16x128xbf16>, vector<8x128xf32> -> vector<8x128xf32>
    %62 = vector.extract_strided_slice %59 {offsets = [0, 0], sizes = [8, 16], strides = [1, 1]} : vector<8x128xf32> to vector<8x16xf32>
    %63 = vector.extract_strided_slice %61 {offsets = [0, 0], sizes = [8, 16], strides = [1, 1]} : vector<8x128xf32> to vector<8x16xf32>
    %64 = arith.addf %62, %63 : vector<8x16xf32>
    %cst_41 = arith.constant 5.000000e-01 : f32
    %65 = vector.broadcast %cst_41 : f32 to vector<8x16xf32>
    %66 = arith.mulf %65, %64 : vector<8x16xf32>
    %67 = math.tanh %66 : vector<8x16xf32>
    %cst_42 = arith.constant 5.000000e-01 : f32
    %68 = vector.broadcast %cst_42 : f32 to vector<8x16xf32>
    %69 = arith.mulf %68, %67 : vector<8x16xf32>
    %cst_43 = arith.constant 5.000000e-01 : f32
    %70 = vector.broadcast %cst_43 : f32 to vector<8x16xf32>
    %71 = arith.addf %70, %69 : vector<8x16xf32>
    %72 = vector.extract_strided_slice %59 {offsets = [0, 16], sizes = [8, 16], strides = [1, 1]} : vector<8x128xf32> to vector<8x16xf32>
    %73 = vector.extract_strided_slice %61 {offsets = [0, 16], sizes = [8, 16], strides = [1, 1]} : vector<8x128xf32> to vector<8x16xf32>
    %74 = arith.addf %72, %73 : vector<8x16xf32>
    %cst_44 = arith.constant 5.000000e-01 : f32
    %75 = vector.broadcast %cst_44 : f32 to vector<8x16xf32>
    %76 = arith.mulf %75, %74 : vector<8x16xf32>
    %77 = math.tanh %76 : vector<8x16xf32>
    %cst_45 = arith.constant 5.000000e-01 : f32
    %78 = vector.broadcast %cst_45 : f32 to vector<8x16xf32>
    %79 = arith.mulf %78, %77 : vector<8x16xf32>
    %cst_46 = arith.constant 5.000000e-01 : f32
    %80 = vector.broadcast %cst_46 : f32 to vector<8x16xf32>
    %81 = arith.addf %80, %79 : vector<8x16xf32>
    %82 = vector.extract_strided_slice %59 {offsets = [0, 32], sizes = [8, 16], strides = [1, 1]} : vector<8x128xf32> to vector<8x16xf32>
    %83 = vector.extract_strided_slice %61 {offsets = [0, 32], sizes = [8, 16], strides = [1, 1]} : vector<8x128xf32> to vector<8x16xf32>
    %84 = vector.broadcast %21 : vector<1x16xf32> to vector<8x16xf32>
    %85 = arith.addf %83, %84 : vector<8x16xf32>
    %86 = arith.mulf %71, %85 : vector<8x16xf32>
    %87 = arith.addf %82, %86 : vector<8x16xf32>
    %88 = math.tanh %87 : vector<8x16xf32>
    %cst_47 = arith.constant 1.000000e+00 : f32
    %89 = vector.broadcast %cst_47 : f32 to vector<8x16xf32>
    %90 = arith.subf %89, %81 : vector<8x16xf32>
    %91 = arith.mulf %90, %88 : vector<8x16xf32>
    %92 = arith.mulf %81, %23 : vector<8x16xf32>
    %93 = arith.addf %91, %92 : vector<8x16xf32>
    %c0_48 = arith.constant 0 : index
    %c0_49 = arith.constant 0 : index
    %94 = vector.load %arg17[%c0_48, %c0_49] : memref<64x16xf32, #tpu.memory_space<vmem>>, vector<8x16xf32>
    tpu.vector_store %arg17[%c0_48, %c0_49], %58 {strides = array<i32>} : memref<64x16xf32, #tpu.memory_space<vmem>>, vector<8x16xf32>,
    %c56_50 = arith.constant 56 : index
    %c0_51 = arith.constant 0 : index
    %95 = vector.load %arg18[%c56_50, %c0_51] : memref<64x16xf32, #tpu.memory_space<vmem>>, vector<8x16xf32>
    tpu.vector_store %arg18[%c56_50, %c0_51], %93 {strides = array<i32>} : memref<64x16xf32, #tpu.memory_space<vmem>>, vector<8x16xf32>,
    %c8 = arith.constant 8 : index
    %c0_52 = arith.constant 0 : index
    %96 = vector.load %arg15[%c8, %c0_52] : memref<64x128xf32, #tpu.memory_space<vmem>>, vector<8x128xf32>
    %97 = arith.truncf %58 : vector<8x16xf32> to vector<8x16xbf16>
    %cst_53 = arith.constant dense<0.000000e+00> : vector<8x128xf32>
    %98 = tpu.matmul %97, %18, %cst_53 {dimension_numbers = #tpu.dot_dimension_numbers<[1], [0], [0], [1], [0, 0, 1, 1], [], []>} : vector<8x16xbf16>, vector<16x128xbf16>, vector<8x128xf32> -> vector<8x128xf32>
    %99 = vector.extract_strided_slice %96 {offsets = [0, 0], sizes = [8, 16], strides = [1, 1]} : vector<8x128xf32> to vector<8x16xf32>
    %100 = vector.extract_strided_slice %98 {offsets = [0, 0], sizes = [8, 16], strides = [1, 1]} : vector<8x128xf32> to vector<8x16xf32>
    %101 = arith.addf %99, %100 : vector<8x16xf32>
    %cst_54 = arith.constant 5.000000e-01 : f32
    %102 = vector.broadcast %cst_54 : f32 to vector<8x16xf32>
    %103 = arith.mulf %102, %101 : vector<8x16xf32>
    %104 = math.tanh %103 : vector<8x16xf32>
    %cst_55 = arith.constant 5.000000e-01 : f32
    %105 = vector.broadcast %cst_55 : f32 to vector<8x16xf32>
    %106 = arith.mulf %105, %104 : vector<8x16xf32>
    %cst_56 = arith.constant 5.000000e-01 : f32
    %107 = vector.broadcast %cst_56 : f32 to vector<8x16xf32>
    %108 = arith.addf %107, %106 : vector<8x16xf32>
    %109 = vector.extract_strided_slice %96 {offsets = [0, 16], sizes = [8, 16], strides = [1, 1]} : vector<8x128xf32> to vector<8x16xf32>
    %110 = vector.extract_strided_slice %98 {offsets = [0, 16], sizes = [8, 16], strides = [1, 1]} : vector<8x128xf32> to vector<8x16xf32>
    %111 = arith.addf %109, %110 : vector<8x16xf32>
    %cst_57 = arith.constant 5.000000e-01 : f32
    %112 = vector.broadcast %cst_57 : f32 to vector<8x16xf32>
    %113 = arith.mulf %112, %111 : vector<8x16xf32>
    %114 = math.tanh %113 : vector<8x16xf32>
    %cst_58 = arith.constant 5.000000e-01 : f32
    %115 = vector.broadcast %cst_58 : f32 to vector<8x16xf32>
    %116 = arith.mulf %115, %114 : vector<8x16xf32>
    %cst_59 = arith.constant 5.000000e-01 : f32
    %117 = vector.broadcast %cst_59 : f32 to vector<8x16xf32>
    %118 = arith.addf %117, %116 : vector<8x16xf32>
    %119 = vector.extract_strided_slice %96 {offsets = [0, 32], sizes = [8, 16], strides = [1, 1]} : vector<8x128xf32> to vector<8x16xf32>
    %120 = vector.extract_strided_slice %98 {offsets = [0, 32], sizes = [8, 16], strides = [1, 1]} : vector<8x128xf32> to vector<8x16xf32>
    %121 = vector.broadcast %20 : vector<1x16xf32> to vector<8x16xf32>
    %122 = arith.addf %120, %121 : vector<8x16xf32>
    %123 = arith.mulf %108, %122 : vector<8x16xf32>
    %124 = arith.addf %119, %123 : vector<8x16xf32>
    %125 = math.tanh %124 : vector<8x16xf32>
    %cst_60 = arith.constant 1.000000e+00 : f32
    %126 = vector.broadcast %cst_60 : f32 to vector<8x16xf32>
    %127 = arith.subf %126, %118 : vector<8x16xf32>
    %128 = arith.mulf %127, %125 : vector<8x16xf32>
    %129 = arith.mulf %118, %58 : vector<8x16xf32>
    %130 = arith.addf %128, %129 : vector<8x16xf32>
    %c48 = arith.constant 48 : index
    %c0_61 = arith.constant 0 : index
    %131 = vector.load %arg16[%c48, %c0_61] : memref<64x128xf32, #tpu.memory_space<vmem>>, vector<8x128xf32>
    %132 = arith.truncf %93 : vector<8x16xf32> to vector<8x16xbf16>
    %cst_62 = arith.constant dense<0.000000e+00> : vector<8x128xf32>
    %133 = tpu.matmul %132, %19, %cst_62 {dimension_numbers = #tpu.dot_dimension_numbers<[1], [0], [0], [1], [0, 0, 1, 1], [], []>} : vector<8x16xbf16>, vector<16x128xbf16>, vector<8x128xf32> -> vector<8x128xf32>
    %134 = vector.extract_strided_slice %131 {offsets = [0, 0], sizes = [8, 16], strides = [1, 1]} : vector<8x128xf32> to vector<8x16xf32>
    %135 = vector.extract_strided_slice %133 {offsets = [0, 0], sizes = [8, 16], strides = [1, 1]} : vector<8x128xf32> to vector<8x16xf32>
    %136 = arith.addf %134, %135 : vector<8x16xf32>
    %cst_63 = arith.constant 5.000000e-01 : f32
    %137 = vector.broadcast %cst_63 : f32 to vector<8x16xf32>
    %138 = arith.mulf %137, %136 : vector<8x16xf32>
    %139 = math.tanh %138 : vector<8x16xf32>
    %cst_64 = arith.constant 5.000000e-01 : f32
    %140 = vector.broadcast %cst_64 : f32 to vector<8x16xf32>
    %141 = arith.mulf %140, %139 : vector<8x16xf32>
    %cst_65 = arith.constant 5.000000e-01 : f32
    %142 = vector.broadcast %cst_65 : f32 to vector<8x16xf32>
    %143 = arith.addf %142, %141 : vector<8x16xf32>
    %144 = vector.extract_strided_slice %131 {offsets = [0, 16], sizes = [8, 16], strides = [1, 1]} : vector<8x128xf32> to vector<8x16xf32>
    %145 = vector.extract_strided_slice %133 {offsets = [0, 16], sizes = [8, 16], strides = [1, 1]} : vector<8x128xf32> to vector<8x16xf32>
    %146 = arith.addf %144, %145 : vector<8x16xf32>
    %cst_66 = arith.constant 5.000000e-01 : f32
    %147 = vector.broadcast %cst_66 : f32 to vector<8x16xf32>
    %148 = arith.mulf %147, %146 : vector<8x16xf32>
    %149 = math.tanh %148 : vector<8x16xf32>
    %cst_67 = arith.constant 5.000000e-01 : f32
    %150 = vector.broadcast %cst_67 : f32 to vector<8x16xf32>
    %151 = arith.mulf %150, %149 : vector<8x16xf32>
    %cst_68 = arith.constant 5.000000e-01 : f32
    %152 = vector.broadcast %cst_68 : f32 to vector<8x16xf32>
    %153 = arith.addf %152, %151 : vector<8x16xf32>
    %154 = vector.extract_strided_slice %131 {offsets = [0, 32], sizes = [8, 16], strides = [1, 1]} : vector<8x128xf32> to vector<8x16xf32>
    %155 = vector.extract_strided_slice %133 {offsets = [0, 32], sizes = [8, 16], strides = [1, 1]} : vector<8x128xf32> to vector<8x16xf32>
    %156 = vector.broadcast %21 : vector<1x16xf32> to vector<8x16xf32>
    %157 = arith.addf %155, %156 : vector<8x16xf32>
    %158 = arith.mulf %143, %157 : vector<8x16xf32>
    %159 = arith.addf %154, %158 : vector<8x16xf32>
    %160 = math.tanh %159 : vector<8x16xf32>
    %cst_69 = arith.constant 1.000000e+00 : f32
    %161 = vector.broadcast %cst_69 : f32 to vector<8x16xf32>
    %162 = arith.subf %161, %153 : vector<8x16xf32>
    %163 = arith.mulf %162, %160 : vector<8x16xf32>
    %164 = arith.mulf %153, %93 : vector<8x16xf32>
    %165 = arith.addf %163, %164 : vector<8x16xf32>
    %c8_70 = arith.constant 8 : index
    %c0_71 = arith.constant 0 : index
    %166 = vector.load %arg17[%c8_70, %c0_71] : memref<64x16xf32, #tpu.memory_space<vmem>>, vector<8x16xf32>
    tpu.vector_store %arg17[%c8_70, %c0_71], %130 {strides = array<i32>} : memref<64x16xf32, #tpu.memory_space<vmem>>, vector<8x16xf32>,
    %c48_72 = arith.constant 48 : index
    %c0_73 = arith.constant 0 : index
    %167 = vector.load %arg18[%c48_72, %c0_73] : memref<64x16xf32, #tpu.memory_space<vmem>>, vector<8x16xf32>
    tpu.vector_store %arg18[%c48_72, %c0_73], %165 {strides = array<i32>} : memref<64x16xf32, #tpu.memory_space<vmem>>, vector<8x16xf32>,
    %c16 = arith.constant 16 : index
    %c0_74 = arith.constant 0 : index
    %168 = vector.load %arg15[%c16, %c0_74] : memref<64x128xf32, #tpu.memory_space<vmem>>, vector<8x128xf32>
    %169 = arith.truncf %130 : vector<8x16xf32> to vector<8x16xbf16>
    %cst_75 = arith.constant dense<0.000000e+00> : vector<8x128xf32>
    %170 = tpu.matmul %169, %18, %cst_75 {dimension_numbers = #tpu.dot_dimension_numbers<[1], [0], [0], [1], [0, 0, 1, 1], [], []>} : vector<8x16xbf16>, vector<16x128xbf16>, vector<8x128xf32> -> vector<8x128xf32>
    %171 = vector.extract_strided_slice %168 {offsets = [0, 0], sizes = [8, 16], strides = [1, 1]} : vector<8x128xf32> to vector<8x16xf32>
    %172 = vector.extract_strided_slice %170 {offsets = [0, 0], sizes = [8, 16], strides = [1, 1]} : vector<8x128xf32> to vector<8x16xf32>
    %173 = arith.addf %171, %172 : vector<8x16xf32>
    %cst_76 = arith.constant 5.000000e-01 : f32
    %174 = vector.broadcast %cst_76 : f32 to vector<8x16xf32>
    %175 = arith.mulf %174, %173 : vector<8x16xf32>
    %176 = math.tanh %175 : vector<8x16xf32>
    %cst_77 = arith.constant 5.000000e-01 : f32
    %177 = vector.broadcast %cst_77 : f32 to vector<8x16xf32>
    %178 = arith.mulf %177, %176 : vector<8x16xf32>
    %cst_78 = arith.constant 5.000000e-01 : f32
    %179 = vector.broadcast %cst_78 : f32 to vector<8x16xf32>
    %180 = arith.addf %179, %178 : vector<8x16xf32>
    %181 = vector.extract_strided_slice %168 {offsets = [0, 16], sizes = [8, 16], strides = [1, 1]} : vector<8x128xf32> to vector<8x16xf32>
    %182 = vector.extract_strided_slice %170 {offsets = [0, 16], sizes = [8, 16], strides = [1, 1]} : vector<8x128xf32> to vector<8x16xf32>
    %183 = arith.addf %181, %182 : vector<8x16xf32>
    %cst_79 = arith.constant 5.000000e-01 : f32
    %184 = vector.broadcast %cst_79 : f32 to vector<8x16xf32>
    %185 = arith.mulf %184, %183 : vector<8x16xf32>
    %186 = math.tanh %185 : vector<8x16xf32>
    %cst_80 = arith.constant 5.000000e-01 : f32
    %187 = vector.broadcast %cst_80 : f32 to vector<8x16xf32>
    %188 = arith.mulf %187, %186 : vector<8x16xf32>
    %cst_81 = arith.constant 5.000000e-01 : f32
    %189 = vector.broadcast %cst_81 : f32 to vector<8x16xf32>
    %190 = arith.addf %189, %188 : vector<8x16xf32>
    %191 = vector.extract_strided_slice %168 {offsets = [0, 32], sizes = [8, 16], strides = [1, 1]} : vector<8x128xf32> to vector<8x16xf32>
    %192 = vector.extract_strided_slice %170 {offsets = [0, 32], sizes = [8, 16], strides = [1, 1]} : vector<8x128xf32> to vector<8x16xf32>
    %193 = vector.broadcast %20 : vector<1x16xf32> to vector<8x16xf32>
    %194 = arith.addf %192, %193 : vector<8x16xf32>
    %195 = arith.mulf %180, %194 : vector<8x16xf32>
    %196 = arith.addf %191, %195 : vector<8x16xf32>
    %197 = math.tanh %196 : vector<8x16xf32>
    %cst_82 = arith.constant 1.000000e+00 : f32
    %198 = vector.broadcast %cst_82 : f32 to vector<8x16xf32>
    %199 = arith.subf %198, %190 : vector<8x16xf32>
    %200 = arith.mulf %199, %197 : vector<8x16xf32>
    %201 = arith.mulf %190, %130 : vector<8x16xf32>
    %202 = arith.addf %200, %201 : vector<8x16xf32>
    %c40 = arith.constant 40 : index
    %c0_83 = arith.constant 0 : index
    %203 = vector.load %arg16[%c40, %c0_83] : memref<64x128xf32, #tpu.memory_space<vmem>>, vector<8x128xf32>
    %204 = arith.truncf %165 : vector<8x16xf32> to vector<8x16xbf16>
    %cst_84 = arith.constant dense<0.000000e+00> : vector<8x128xf32>
    %205 = tpu.matmul %204, %19, %cst_84 {dimension_numbers = #tpu.dot_dimension_numbers<[1], [0], [0], [1], [0, 0, 1, 1], [], []>} : vector<8x16xbf16>, vector<16x128xbf16>, vector<8x128xf32> -> vector<8x128xf32>
    %206 = vector.extract_strided_slice %203 {offsets = [0, 0], sizes = [8, 16], strides = [1, 1]} : vector<8x128xf32> to vector<8x16xf32>
    %207 = vector.extract_strided_slice %205 {offsets = [0, 0], sizes = [8, 16], strides = [1, 1]} : vector<8x128xf32> to vector<8x16xf32>
    %208 = arith.addf %206, %207 : vector<8x16xf32>
    %cst_85 = arith.constant 5.000000e-01 : f32
    %209 = vector.broadcast %cst_85 : f32 to vector<8x16xf32>
    %210 = arith.mulf %209, %208 : vector<8x16xf32>
    %211 = math.tanh %210 : vector<8x16xf32>
    %cst_86 = arith.constant 5.000000e-01 : f32
    %212 = vector.broadcast %cst_86 : f32 to vector<8x16xf32>
    %213 = arith.mulf %212, %211 : vector<8x16xf32>
    %cst_87 = arith.constant 5.000000e-01 : f32
    %214 = vector.broadcast %cst_87 : f32 to vector<8x16xf32>
    %215 = arith.addf %214, %213 : vector<8x16xf32>
    %216 = vector.extract_strided_slice %203 {offsets = [0, 16], sizes = [8, 16], strides = [1, 1]} : vector<8x128xf32> to vector<8x16xf32>
    %217 = vector.extract_strided_slice %205 {offsets = [0, 16], sizes = [8, 16], strides = [1, 1]} : vector<8x128xf32> to vector<8x16xf32>
    %218 = arith.addf %216, %217 : vector<8x16xf32>
    %cst_88 = arith.constant 5.000000e-01 : f32
    %219 = vector.broadcast %cst_88 : f32 to vector<8x16xf32>
    %220 = arith.mulf %219, %218 : vector<8x16xf32>
    %221 = math.tanh %220 : vector<8x16xf32>
    %cst_89 = arith.constant 5.000000e-01 : f32
    %222 = vector.broadcast %cst_89 : f32 to vector<8x16xf32>
    %223 = arith.mulf %222, %221 : vector<8x16xf32>
    %cst_90 = arith.constant 5.000000e-01 : f32
    %224 = vector.broadcast %cst_90 : f32 to vector<8x16xf32>
    %225 = arith.addf %224, %223 : vector<8x16xf32>
    %226 = vector.extract_strided_slice %203 {offsets = [0, 32], sizes = [8, 16], strides = [1, 1]} : vector<8x128xf32> to vector<8x16xf32>
    %227 = vector.extract_strided_slice %205 {offsets = [0, 32], sizes = [8, 16], strides = [1, 1]} : vector<8x128xf32> to vector<8x16xf32>
    %228 = vector.broadcast %21 : vector<1x16xf32> to vector<8x16xf32>
    %229 = arith.addf %227, %228 : vector<8x16xf32>
    %230 = arith.mulf %215, %229 : vector<8x16xf32>
    %231 = arith.addf %226, %230 : vector<8x16xf32>
    %232 = math.tanh %231 : vector<8x16xf32>
    %cst_91 = arith.constant 1.000000e+00 : f32
    %233 = vector.broadcast %cst_91 : f32 to vector<8x16xf32>
    %234 = arith.subf %233, %225 : vector<8x16xf32>
    %235 = arith.mulf %234, %232 : vector<8x16xf32>
    %236 = arith.mulf %225, %165 : vector<8x16xf32>
    %237 = arith.addf %235, %236 : vector<8x16xf32>
    %c16_92 = arith.constant 16 : index
    %c0_93 = arith.constant 0 : index
    %238 = vector.load %arg17[%c16_92, %c0_93] : memref<64x16xf32, #tpu.memory_space<vmem>>, vector<8x16xf32>
    tpu.vector_store %arg17[%c16_92, %c0_93], %202 {strides = array<i32>} : memref<64x16xf32, #tpu.memory_space<vmem>>, vector<8x16xf32>,
    %c40_94 = arith.constant 40 : index
    %c0_95 = arith.constant 0 : index
    %239 = vector.load %arg18[%c40_94, %c0_95] : memref<64x16xf32, #tpu.memory_space<vmem>>, vector<8x16xf32>
    tpu.vector_store %arg18[%c40_94, %c0_95], %237 {strides = array<i32>} : memref<64x16xf32, #tpu.memory_space<vmem>>, vector<8x16xf32>,
    %c24 = arith.constant 24 : index
    %c0_96 = arith.constant 0 : index
    %240 = vector.load %arg15[%c24, %c0_96] : memref<64x128xf32, #tpu.memory_space<vmem>>, vector<8x128xf32>
    %241 = arith.truncf %202 : vector<8x16xf32> to vector<8x16xbf16>
    %cst_97 = arith.constant dense<0.000000e+00> : vector<8x128xf32>
    %242 = tpu.matmul %241, %18, %cst_97 {dimension_numbers = #tpu.dot_dimension_numbers<[1], [0], [0], [1], [0, 0, 1, 1], [], []>} : vector<8x16xbf16>, vector<16x128xbf16>, vector<8x128xf32> -> vector<8x128xf32>
    %243 = vector.extract_strided_slice %240 {offsets = [0, 0], sizes = [8, 16], strides = [1, 1]} : vector<8x128xf32> to vector<8x16xf32>
    %244 = vector.extract_strided_slice %242 {offsets = [0, 0], sizes = [8, 16], strides = [1, 1]} : vector<8x128xf32> to vector<8x16xf32>
    %245 = arith.addf %243, %244 : vector<8x16xf32>
    %cst_98 = arith.constant 5.000000e-01 : f32
    %246 = vector.broadcast %cst_98 : f32 to vector<8x16xf32>
    %247 = arith.mulf %246, %245 : vector<8x16xf32>
    %248 = math.tanh %247 : vector<8x16xf32>
    %cst_99 = arith.constant 5.000000e-01 : f32
    %249 = vector.broadcast %cst_99 : f32 to vector<8x16xf32>
    %250 = arith.mulf %249, %248 : vector<8x16xf32>
    %cst_100 = arith.constant 5.000000e-01 : f32
    %251 = vector.broadcast %cst_100 : f32 to vector<8x16xf32>
    %252 = arith.addf %251, %250 : vector<8x16xf32>
    %253 = vector.extract_strided_slice %240 {offsets = [0, 16], sizes = [8, 16], strides = [1, 1]} : vector<8x128xf32> to vector<8x16xf32>
    %254 = vector.extract_strided_slice %242 {offsets = [0, 16], sizes = [8, 16], strides = [1, 1]} : vector<8x128xf32> to vector<8x16xf32>
    %255 = arith.addf %253, %254 : vector<8x16xf32>
    %cst_101 = arith.constant 5.000000e-01 : f32
    %256 = vector.broadcast %cst_101 : f32 to vector<8x16xf32>
    %257 = arith.mulf %256, %255 : vector<8x16xf32>
    %258 = math.tanh %257 : vector<8x16xf32>
    %cst_102 = arith.constant 5.000000e-01 : f32
    %259 = vector.broadcast %cst_102 : f32 to vector<8x16xf32>
    %260 = arith.mulf %259, %258 : vector<8x16xf32>
    %cst_103 = arith.constant 5.000000e-01 : f32
    %261 = vector.broadcast %cst_103 : f32 to vector<8x16xf32>
    %262 = arith.addf %261, %260 : vector<8x16xf32>
    %263 = vector.extract_strided_slice %240 {offsets = [0, 32], sizes = [8, 16], strides = [1, 1]} : vector<8x128xf32> to vector<8x16xf32>
    %264 = vector.extract_strided_slice %242 {offsets = [0, 32], sizes = [8, 16], strides = [1, 1]} : vector<8x128xf32> to vector<8x16xf32>
    %265 = vector.broadcast %20 : vector<1x16xf32> to vector<8x16xf32>
    %266 = arith.addf %264, %265 : vector<8x16xf32>
    %267 = arith.mulf %252, %266 : vector<8x16xf32>
    %268 = arith.addf %263, %267 : vector<8x16xf32>
    %269 = math.tanh %268 : vector<8x16xf32>
    %cst_104 = arith.constant 1.000000e+00 : f32
    %270 = vector.broadcast %cst_104 : f32 to vector<8x16xf32>
    %271 = arith.subf %270, %262 : vector<8x16xf32>
    %272 = arith.mulf %271, %269 : vector<8x16xf32>
    %273 = arith.mulf %262, %202 : vector<8x16xf32>
    %274 = arith.addf %272, %273 : vector<8x16xf32>
    %c32 = arith.constant 32 : index
    %c0_105 = arith.constant 0 : index
    %275 = vector.load %arg16[%c32, %c0_105] : memref<64x128xf32, #tpu.memory_space<vmem>>, vector<8x128xf32>
    %276 = arith.truncf %237 : vector<8x16xf32> to vector<8x16xbf16>
    %cst_106 = arith.constant dense<0.000000e+00> : vector<8x128xf32>
    %277 = tpu.matmul %276, %19, %cst_106 {dimension_numbers = #tpu.dot_dimension_numbers<[1], [0], [0], [1], [0, 0, 1, 1], [], []>} : vector<8x16xbf16>, vector<16x128xbf16>, vector<8x128xf32> -> vector<8x128xf32>
    %278 = vector.extract_strided_slice %275 {offsets = [0, 0], sizes = [8, 16], strides = [1, 1]} : vector<8x128xf32> to vector<8x16xf32>
    %279 = vector.extract_strided_slice %277 {offsets = [0, 0], sizes = [8, 16], strides = [1, 1]} : vector<8x128xf32> to vector<8x16xf32>
    %280 = arith.addf %278, %279 : vector<8x16xf32>
    %cst_107 = arith.constant 5.000000e-01 : f32
    %281 = vector.broadcast %cst_107 : f32 to vector<8x16xf32>
    %282 = arith.mulf %281, %280 : vector<8x16xf32>
    %283 = math.tanh %282 : vector<8x16xf32>
    %cst_108 = arith.constant 5.000000e-01 : f32
    %284 = vector.broadcast %cst_108 : f32 to vector<8x16xf32>
    %285 = arith.mulf %284, %283 : vector<8x16xf32>
    %cst_109 = arith.constant 5.000000e-01 : f32
    %286 = vector.broadcast %cst_109 : f32 to vector<8x16xf32>
    %287 = arith.addf %286, %285 : vector<8x16xf32>
    %288 = vector.extract_strided_slice %275 {offsets = [0, 16], sizes = [8, 16], strides = [1, 1]} : vector<8x128xf32> to vector<8x16xf32>
    %289 = vector.extract_strided_slice %277 {offsets = [0, 16], sizes = [8, 16], strides = [1, 1]} : vector<8x128xf32> to vector<8x16xf32>
    %290 = arith.addf %288, %289 : vector<8x16xf32>
    %cst_110 = arith.constant 5.000000e-01 : f32
    %291 = vector.broadcast %cst_110 : f32 to vector<8x16xf32>
    %292 = arith.mulf %291, %290 : vector<8x16xf32>
    %293 = math.tanh %292 : vector<8x16xf32>
    %cst_111 = arith.constant 5.000000e-01 : f32
    %294 = vector.broadcast %cst_111 : f32 to vector<8x16xf32>
    %295 = arith.mulf %294, %293 : vector<8x16xf32>
    %cst_112 = arith.constant 5.000000e-01 : f32
    %296 = vector.broadcast %cst_112 : f32 to vector<8x16xf32>
    %297 = arith.addf %296, %295 : vector<8x16xf32>
    %298 = vector.extract_strided_slice %275 {offsets = [0, 32], sizes = [8, 16], strides = [1, 1]} : vector<8x128xf32> to vector<8x16xf32>
    %299 = vector.extract_strided_slice %277 {offsets = [0, 32], sizes = [8, 16], strides = [1, 1]} : vector<8x128xf32> to vector<8x16xf32>
    %300 = vector.broadcast %21 : vector<1x16xf32> to vector<8x16xf32>
    %301 = arith.addf %299, %300 : vector<8x16xf32>
    %302 = arith.mulf %287, %301 : vector<8x16xf32>
    %303 = arith.addf %298, %302 : vector<8x16xf32>
    %304 = math.tanh %303 : vector<8x16xf32>
    %cst_113 = arith.constant 1.000000e+00 : f32
    %305 = vector.broadcast %cst_113 : f32 to vector<8x16xf32>
    %306 = arith.subf %305, %297 : vector<8x16xf32>
    %307 = arith.mulf %306, %304 : vector<8x16xf32>
    %308 = arith.mulf %297, %237 : vector<8x16xf32>
    %309 = arith.addf %307, %308 : vector<8x16xf32>
    %c24_114 = arith.constant 24 : index
    %c0_115 = arith.constant 0 : index
    %310 = vector.load %arg17[%c24_114, %c0_115] : memref<64x16xf32, #tpu.memory_space<vmem>>, vector<8x16xf32>
    tpu.vector_store %arg17[%c24_114, %c0_115], %274 {strides = array<i32>} : memref<64x16xf32, #tpu.memory_space<vmem>>, vector<8x16xf32>,
    %c32_116 = arith.constant 32 : index
    %c0_117 = arith.constant 0 : index
    %311 = vector.load %arg18[%c32_116, %c0_117] : memref<64x16xf32, #tpu.memory_space<vmem>>, vector<8x16xf32>
    tpu.vector_store %arg18[%c32_116, %c0_117], %309 {strides = array<i32>} : memref<64x16xf32, #tpu.memory_space<vmem>>, vector<8x16xf32>,
    %c32_118 = arith.constant 32 : index
    %c0_119 = arith.constant 0 : index
    %312 = vector.load %arg15[%c32_118, %c0_119] : memref<64x128xf32, #tpu.memory_space<vmem>>, vector<8x128xf32>
    %313 = arith.truncf %274 : vector<8x16xf32> to vector<8x16xbf16>
    %cst_120 = arith.constant dense<0.000000e+00> : vector<8x128xf32>
    %314 = tpu.matmul %313, %18, %cst_120 {dimension_numbers = #tpu.dot_dimension_numbers<[1], [0], [0], [1], [0, 0, 1, 1], [], []>} : vector<8x16xbf16>, vector<16x128xbf16>, vector<8x128xf32> -> vector<8x128xf32>
    %315 = vector.extract_strided_slice %312 {offsets = [0, 0], sizes = [8, 16], strides = [1, 1]} : vector<8x128xf32> to vector<8x16xf32>
    %316 = vector.extract_strided_slice %314 {offsets = [0, 0], sizes = [8, 16], strides = [1, 1]} : vector<8x128xf32> to vector<8x16xf32>
    %317 = arith.addf %315, %316 : vector<8x16xf32>
    %cst_121 = arith.constant 5.000000e-01 : f32
    %318 = vector.broadcast %cst_121 : f32 to vector<8x16xf32>
    %319 = arith.mulf %318, %317 : vector<8x16xf32>
    %320 = math.tanh %319 : vector<8x16xf32>
    %cst_122 = arith.constant 5.000000e-01 : f32
    %321 = vector.broadcast %cst_122 : f32 to vector<8x16xf32>
    %322 = arith.mulf %321, %320 : vector<8x16xf32>
    %cst_123 = arith.constant 5.000000e-01 : f32
    %323 = vector.broadcast %cst_123 : f32 to vector<8x16xf32>
    %324 = arith.addf %323, %322 : vector<8x16xf32>
    %325 = vector.extract_strided_slice %312 {offsets = [0, 16], sizes = [8, 16], strides = [1, 1]} : vector<8x128xf32> to vector<8x16xf32>
    %326 = vector.extract_strided_slice %314 {offsets = [0, 16], sizes = [8, 16], strides = [1, 1]} : vector<8x128xf32> to vector<8x16xf32>
    %327 = arith.addf %325, %326 : vector<8x16xf32>
    %cst_124 = arith.constant 5.000000e-01 : f32
    %328 = vector.broadcast %cst_124 : f32 to vector<8x16xf32>
    %329 = arith.mulf %328, %327 : vector<8x16xf32>
    %330 = math.tanh %329 : vector<8x16xf32>
    %cst_125 = arith.constant 5.000000e-01 : f32
    %331 = vector.broadcast %cst_125 : f32 to vector<8x16xf32>
    %332 = arith.mulf %331, %330 : vector<8x16xf32>
    %cst_126 = arith.constant 5.000000e-01 : f32
    %333 = vector.broadcast %cst_126 : f32 to vector<8x16xf32>
    %334 = arith.addf %333, %332 : vector<8x16xf32>
    %335 = vector.extract_strided_slice %312 {offsets = [0, 32], sizes = [8, 16], strides = [1, 1]} : vector<8x128xf32> to vector<8x16xf32>
    %336 = vector.extract_strided_slice %314 {offsets = [0, 32], sizes = [8, 16], strides = [1, 1]} : vector<8x128xf32> to vector<8x16xf32>
    %337 = vector.broadcast %20 : vector<1x16xf32> to vector<8x16xf32>
    %338 = arith.addf %336, %337 : vector<8x16xf32>
    %339 = arith.mulf %324, %338 : vector<8x16xf32>
    %340 = arith.addf %335, %339 : vector<8x16xf32>
    %341 = math.tanh %340 : vector<8x16xf32>
    %cst_127 = arith.constant 1.000000e+00 : f32
    %342 = vector.broadcast %cst_127 : f32 to vector<8x16xf32>
    %343 = arith.subf %342, %334 : vector<8x16xf32>
    %344 = arith.mulf %343, %341 : vector<8x16xf32>
    %345 = arith.mulf %334, %274 : vector<8x16xf32>
    %346 = arith.addf %344, %345 : vector<8x16xf32>
    %c24_128 = arith.constant 24 : index
    %c0_129 = arith.constant 0 : index
    %347 = vector.load %arg16[%c24_128, %c0_129] : memref<64x128xf32, #tpu.memory_space<vmem>>, vector<8x128xf32>
    %348 = arith.truncf %309 : vector<8x16xf32> to vector<8x16xbf16>
    %cst_130 = arith.constant dense<0.000000e+00> : vector<8x128xf32>
    %349 = tpu.matmul %348, %19, %cst_130 {dimension_numbers = #tpu.dot_dimension_numbers<[1], [0], [0], [1], [0, 0, 1, 1], [], []>} : vector<8x16xbf16>, vector<16x128xbf16>, vector<8x128xf32> -> vector<8x128xf32>
    %350 = vector.extract_strided_slice %347 {offsets = [0, 0], sizes = [8, 16], strides = [1, 1]} : vector<8x128xf32> to vector<8x16xf32>
    %351 = vector.extract_strided_slice %349 {offsets = [0, 0], sizes = [8, 16], strides = [1, 1]} : vector<8x128xf32> to vector<8x16xf32>
    %352 = arith.addf %350, %351 : vector<8x16xf32>
    %cst_131 = arith.constant 5.000000e-01 : f32
    %353 = vector.broadcast %cst_131 : f32 to vector<8x16xf32>
    %354 = arith.mulf %353, %352 : vector<8x16xf32>
    %355 = math.tanh %354 : vector<8x16xf32>
    %cst_132 = arith.constant 5.000000e-01 : f32
    %356 = vector.broadcast %cst_132 : f32 to vector<8x16xf32>
    %357 = arith.mulf %356, %355 : vector<8x16xf32>
    %cst_133 = arith.constant 5.000000e-01 : f32
    %358 = vector.broadcast %cst_133 : f32 to vector<8x16xf32>
    %359 = arith.addf %358, %357 : vector<8x16xf32>
    %360 = vector.extract_strided_slice %347 {offsets = [0, 16], sizes = [8, 16], strides = [1, 1]} : vector<8x128xf32> to vector<8x16xf32>
    %361 = vector.extract_strided_slice %349 {offsets = [0, 16], sizes = [8, 16], strides = [1, 1]} : vector<8x128xf32> to vector<8x16xf32>
    %362 = arith.addf %360, %361 : vector<8x16xf32>
    %cst_134 = arith.constant 5.000000e-01 : f32
    %363 = vector.broadcast %cst_134 : f32 to vector<8x16xf32>
    %364 = arith.mulf %363, %362 : vector<8x16xf32>
    %365 = math.tanh %364 : vector<8x16xf32>
    %cst_135 = arith.constant 5.000000e-01 : f32
    %366 = vector.broadcast %cst_135 : f32 to vector<8x16xf32>
    %367 = arith.mulf %366, %365 : vector<8x16xf32>
    %cst_136 = arith.constant 5.000000e-01 : f32
    %368 = vector.broadcast %cst_136 : f32 to vector<8x16xf32>
    %369 = arith.addf %368, %367 : vector<8x16xf32>
    %370 = vector.extract_strided_slice %347 {offsets = [0, 32], sizes = [8, 16], strides = [1, 1]} : vector<8x128xf32> to vector<8x16xf32>
    %371 = vector.extract_strided_slice %349 {offsets = [0, 32], sizes = [8, 16], strides = [1, 1]} : vector<8x128xf32> to vector<8x16xf32>
    %372 = vector.broadcast %21 : vector<1x16xf32> to vector<8x16xf32>
    %373 = arith.addf %371, %372 : vector<8x16xf32>
    %374 = arith.mulf %359, %373 : vector<8x16xf32>
    %375 = arith.addf %370, %374 : vector<8x16xf32>
    %376 = math.tanh %375 : vector<8x16xf32>
    %cst_137 = arith.constant 1.000000e+00 : f32
    %377 = vector.broadcast %cst_137 : f32 to vector<8x16xf32>
    %378 = arith.subf %377, %369 : vector<8x16xf32>
    %379 = arith.mulf %378, %376 : vector<8x16xf32>
    %380 = arith.mulf %369, %309 : vector<8x16xf32>
    %381 = arith.addf %379, %380 : vector<8x16xf32>
    %c32_138 = arith.constant 32 : index
    %c0_139 = arith.constant 0 : index
    %382 = vector.load %arg17[%c32_138, %c0_139] : memref<64x16xf32, #tpu.memory_space<vmem>>, vector<8x16xf32>
    tpu.vector_store %arg17[%c32_138, %c0_139], %346 {strides = array<i32>} : memref<64x16xf32, #tpu.memory_space<vmem>>, vector<8x16xf32>,
    %c24_140 = arith.constant 24 : index
    %c0_141 = arith.constant 0 : index
    %383 = vector.load %arg18[%c24_140, %c0_141] : memref<64x16xf32, #tpu.memory_space<vmem>>, vector<8x16xf32>
    tpu.vector_store %arg18[%c24_140, %c0_141], %381 {strides = array<i32>} : memref<64x16xf32, #tpu.memory_space<vmem>>, vector<8x16xf32>,
    %c40_142 = arith.constant 40 : index
    %c0_143 = arith.constant 0 : index
    %384 = vector.load %arg15[%c40_142, %c0_143] : memref<64x128xf32, #tpu.memory_space<vmem>>, vector<8x128xf32>
    %385 = arith.truncf %346 : vector<8x16xf32> to vector<8x16xbf16>
    %cst_144 = arith.constant dense<0.000000e+00> : vector<8x128xf32>
    %386 = tpu.matmul %385, %18, %cst_144 {dimension_numbers = #tpu.dot_dimension_numbers<[1], [0], [0], [1], [0, 0, 1, 1], [], []>} : vector<8x16xbf16>, vector<16x128xbf16>, vector<8x128xf32> -> vector<8x128xf32>
    %387 = vector.extract_strided_slice %384 {offsets = [0, 0], sizes = [8, 16], strides = [1, 1]} : vector<8x128xf32> to vector<8x16xf32>
    %388 = vector.extract_strided_slice %386 {offsets = [0, 0], sizes = [8, 16], strides = [1, 1]} : vector<8x128xf32> to vector<8x16xf32>
    %389 = arith.addf %387, %388 : vector<8x16xf32>
    %cst_145 = arith.constant 5.000000e-01 : f32
    %390 = vector.broadcast %cst_145 : f32 to vector<8x16xf32>
    %391 = arith.mulf %390, %389 : vector<8x16xf32>
    %392 = math.tanh %391 : vector<8x16xf32>
    %cst_146 = arith.constant 5.000000e-01 : f32
    %393 = vector.broadcast %cst_146 : f32 to vector<8x16xf32>
    %394 = arith.mulf %393, %392 : vector<8x16xf32>
    %cst_147 = arith.constant 5.000000e-01 : f32
    %395 = vector.broadcast %cst_147 : f32 to vector<8x16xf32>
    %396 = arith.addf %395, %394 : vector<8x16xf32>
    %397 = vector.extract_strided_slice %384 {offsets = [0, 16], sizes = [8, 16], strides = [1, 1]} : vector<8x128xf32> to vector<8x16xf32>
    %398 = vector.extract_strided_slice %386 {offsets = [0, 16], sizes = [8, 16], strides = [1, 1]} : vector<8x128xf32> to vector<8x16xf32>
    %399 = arith.addf %397, %398 : vector<8x16xf32>
    %cst_148 = arith.constant 5.000000e-01 : f32
    %400 = vector.broadcast %cst_148 : f32 to vector<8x16xf32>
    %401 = arith.mulf %400, %399 : vector<8x16xf32>
    %402 = math.tanh %401 : vector<8x16xf32>
    %cst_149 = arith.constant 5.000000e-01 : f32
    %403 = vector.broadcast %cst_149 : f32 to vector<8x16xf32>
    %404 = arith.mulf %403, %402 : vector<8x16xf32>
    %cst_150 = arith.constant 5.000000e-01 : f32
    %405 = vector.broadcast %cst_150 : f32 to vector<8x16xf32>
    %406 = arith.addf %405, %404 : vector<8x16xf32>
    %407 = vector.extract_strided_slice %384 {offsets = [0, 32], sizes = [8, 16], strides = [1, 1]} : vector<8x128xf32> to vector<8x16xf32>
    %408 = vector.extract_strided_slice %386 {offsets = [0, 32], sizes = [8, 16], strides = [1, 1]} : vector<8x128xf32> to vector<8x16xf32>
    %409 = vector.broadcast %20 : vector<1x16xf32> to vector<8x16xf32>
    %410 = arith.addf %408, %409 : vector<8x16xf32>
    %411 = arith.mulf %396, %410 : vector<8x16xf32>
    %412 = arith.addf %407, %411 : vector<8x16xf32>
    %413 = math.tanh %412 : vector<8x16xf32>
    %cst_151 = arith.constant 1.000000e+00 : f32
    %414 = vector.broadcast %cst_151 : f32 to vector<8x16xf32>
    %415 = arith.subf %414, %406 : vector<8x16xf32>
    %416 = arith.mulf %415, %413 : vector<8x16xf32>
    %417 = arith.mulf %406, %346 : vector<8x16xf32>
    %418 = arith.addf %416, %417 : vector<8x16xf32>
    %c16_152 = arith.constant 16 : index
    %c0_153 = arith.constant 0 : index
    %419 = vector.load %arg16[%c16_152, %c0_153] : memref<64x128xf32, #tpu.memory_space<vmem>>, vector<8x128xf32>
    %420 = arith.truncf %381 : vector<8x16xf32> to vector<8x16xbf16>
    %cst_154 = arith.constant dense<0.000000e+00> : vector<8x128xf32>
    %421 = tpu.matmul %420, %19, %cst_154 {dimension_numbers = #tpu.dot_dimension_numbers<[1], [0], [0], [1], [0, 0, 1, 1], [], []>} : vector<8x16xbf16>, vector<16x128xbf16>, vector<8x128xf32> -> vector<8x128xf32>
    %422 = vector.extract_strided_slice %419 {offsets = [0, 0], sizes = [8, 16], strides = [1, 1]} : vector<8x128xf32> to vector<8x16xf32>
    %423 = vector.extract_strided_slice %421 {offsets = [0, 0], sizes = [8, 16], strides = [1, 1]} : vector<8x128xf32> to vector<8x16xf32>
    %424 = arith.addf %422, %423 : vector<8x16xf32>
    %cst_155 = arith.constant 5.000000e-01 : f32
    %425 = vector.broadcast %cst_155 : f32 to vector<8x16xf32>
    %426 = arith.mulf %425, %424 : vector<8x16xf32>
    %427 = math.tanh %426 : vector<8x16xf32>
    %cst_156 = arith.constant 5.000000e-01 : f32
    %428 = vector.broadcast %cst_156 : f32 to vector<8x16xf32>
    %429 = arith.mulf %428, %427 : vector<8x16xf32>
    %cst_157 = arith.constant 5.000000e-01 : f32
    %430 = vector.broadcast %cst_157 : f32 to vector<8x16xf32>
    %431 = arith.addf %430, %429 : vector<8x16xf32>
    %432 = vector.extract_strided_slice %419 {offsets = [0, 16], sizes = [8, 16], strides = [1, 1]} : vector<8x128xf32> to vector<8x16xf32>
    %433 = vector.extract_strided_slice %421 {offsets = [0, 16], sizes = [8, 16], strides = [1, 1]} : vector<8x128xf32> to vector<8x16xf32>
    %434 = arith.addf %432, %433 : vector<8x16xf32>
    %cst_158 = arith.constant 5.000000e-01 : f32
    %435 = vector.broadcast %cst_158 : f32 to vector<8x16xf32>
    %436 = arith.mulf %435, %434 : vector<8x16xf32>
    %437 = math.tanh %436 : vector<8x16xf32>
    %cst_159 = arith.constant 5.000000e-01 : f32
    %438 = vector.broadcast %cst_159 : f32 to vector<8x16xf32>
    %439 = arith.mulf %438, %437 : vector<8x16xf32>
    %cst_160 = arith.constant 5.000000e-01 : f32
    %440 = vector.broadcast %cst_160 : f32 to vector<8x16xf32>
    %441 = arith.addf %440, %439 : vector<8x16xf32>
    %442 = vector.extract_strided_slice %419 {offsets = [0, 32], sizes = [8, 16], strides = [1, 1]} : vector<8x128xf32> to vector<8x16xf32>
    %443 = vector.extract_strided_slice %421 {offsets = [0, 32], sizes = [8, 16], strides = [1, 1]} : vector<8x128xf32> to vector<8x16xf32>
    %444 = vector.broadcast %21 : vector<1x16xf32> to vector<8x16xf32>
    %445 = arith.addf %443, %444 : vector<8x16xf32>
    %446 = arith.mulf %431, %445 : vector<8x16xf32>
    %447 = arith.addf %442, %446 : vector<8x16xf32>
    %448 = math.tanh %447 : vector<8x16xf32>
    %cst_161 = arith.constant 1.000000e+00 : f32
    %449 = vector.broadcast %cst_161 : f32 to vector<8x16xf32>
    %450 = arith.subf %449, %441 : vector<8x16xf32>
    %451 = arith.mulf %450, %448 : vector<8x16xf32>
    %452 = arith.mulf %441, %381 : vector<8x16xf32>
    %453 = arith.addf %451, %452 : vector<8x16xf32>
    %c40_162 = arith.constant 40 : index
    %c0_163 = arith.constant 0 : index
    %454 = vector.load %arg17[%c40_162, %c0_163] : memref<64x16xf32, #tpu.memory_space<vmem>>, vector<8x16xf32>
    tpu.vector_store %arg17[%c40_162, %c0_163], %418 {strides = array<i32>} : memref<64x16xf32, #tpu.memory_space<vmem>>, vector<8x16xf32>,
    %c16_164 = arith.constant 16 : index
    %c0_165 = arith.constant 0 : index
    %455 = vector.load %arg18[%c16_164, %c0_165] : memref<64x16xf32, #tpu.memory_space<vmem>>, vector<8x16xf32>
    tpu.vector_store %arg18[%c16_164, %c0_165], %453 {strides = array<i32>} : memref<64x16xf32, #tpu.memory_space<vmem>>, vector<8x16xf32>,
    %c48_166 = arith.constant 48 : index
    %c0_167 = arith.constant 0 : index
    %456 = vector.load %arg15[%c48_166, %c0_167] : memref<64x128xf32, #tpu.memory_space<vmem>>, vector<8x128xf32>
    %457 = arith.truncf %418 : vector<8x16xf32> to vector<8x16xbf16>
    %cst_168 = arith.constant dense<0.000000e+00> : vector<8x128xf32>
    %458 = tpu.matmul %457, %18, %cst_168 {dimension_numbers = #tpu.dot_dimension_numbers<[1], [0], [0], [1], [0, 0, 1, 1], [], []>} : vector<8x16xbf16>, vector<16x128xbf16>, vector<8x128xf32> -> vector<8x128xf32>
    %459 = vector.extract_strided_slice %456 {offsets = [0, 0], sizes = [8, 16], strides = [1, 1]} : vector<8x128xf32> to vector<8x16xf32>
    %460 = vector.extract_strided_slice %458 {offsets = [0, 0], sizes = [8, 16], strides = [1, 1]} : vector<8x128xf32> to vector<8x16xf32>
    %461 = arith.addf %459, %460 : vector<8x16xf32>
    %cst_169 = arith.constant 5.000000e-01 : f32
    %462 = vector.broadcast %cst_169 : f32 to vector<8x16xf32>
    %463 = arith.mulf %462, %461 : vector<8x16xf32>
    %464 = math.tanh %463 : vector<8x16xf32>
    %cst_170 = arith.constant 5.000000e-01 : f32
    %465 = vector.broadcast %cst_170 : f32 to vector<8x16xf32>
    %466 = arith.mulf %465, %464 : vector<8x16xf32>
    %cst_171 = arith.constant 5.000000e-01 : f32
    %467 = vector.broadcast %cst_171 : f32 to vector<8x16xf32>
    %468 = arith.addf %467, %466 : vector<8x16xf32>
    %469 = vector.extract_strided_slice %456 {offsets = [0, 16], sizes = [8, 16], strides = [1, 1]} : vector<8x128xf32> to vector<8x16xf32>
    %470 = vector.extract_strided_slice %458 {offsets = [0, 16], sizes = [8, 16], strides = [1, 1]} : vector<8x128xf32> to vector<8x16xf32>
    %471 = arith.addf %469, %470 : vector<8x16xf32>
    %cst_172 = arith.constant 5.000000e-01 : f32
    %472 = vector.broadcast %cst_172 : f32 to vector<8x16xf32>
    %473 = arith.mulf %472, %471 : vector<8x16xf32>
    %474 = math.tanh %473 : vector<8x16xf32>
    %cst_173 = arith.constant 5.000000e-01 : f32
    %475 = vector.broadcast %cst_173 : f32 to vector<8x16xf32>
    %476 = arith.mulf %475, %474 : vector<8x16xf32>
    %cst_174 = arith.constant 5.000000e-01 : f32
    %477 = vector.broadcast %cst_174 : f32 to vector<8x16xf32>
    %478 = arith.addf %477, %476 : vector<8x16xf32>
    %479 = vector.extract_strided_slice %456 {offsets = [0, 32], sizes = [8, 16], strides = [1, 1]} : vector<8x128xf32> to vector<8x16xf32>
    %480 = vector.extract_strided_slice %458 {offsets = [0, 32], sizes = [8, 16], strides = [1, 1]} : vector<8x128xf32> to vector<8x16xf32>
    %481 = vector.broadcast %20 : vector<1x16xf32> to vector<8x16xf32>
    %482 = arith.addf %480, %481 : vector<8x16xf32>
    %483 = arith.mulf %468, %482 : vector<8x16xf32>
    %484 = arith.addf %479, %483 : vector<8x16xf32>
    %485 = math.tanh %484 : vector<8x16xf32>
    %cst_175 = arith.constant 1.000000e+00 : f32
    %486 = vector.broadcast %cst_175 : f32 to vector<8x16xf32>
    %487 = arith.subf %486, %478 : vector<8x16xf32>
    %488 = arith.mulf %487, %485 : vector<8x16xf32>
    %489 = arith.mulf %478, %418 : vector<8x16xf32>
    %490 = arith.addf %488, %489 : vector<8x16xf32>
    %c8_176 = arith.constant 8 : index
    %c0_177 = arith.constant 0 : index
    %491 = vector.load %arg16[%c8_176, %c0_177] : memref<64x128xf32, #tpu.memory_space<vmem>>, vector<8x128xf32>
    %492 = arith.truncf %453 : vector<8x16xf32> to vector<8x16xbf16>
    %cst_178 = arith.constant dense<0.000000e+00> : vector<8x128xf32>
    %493 = tpu.matmul %492, %19, %cst_178 {dimension_numbers = #tpu.dot_dimension_numbers<[1], [0], [0], [1], [0, 0, 1, 1], [], []>} : vector<8x16xbf16>, vector<16x128xbf16>, vector<8x128xf32> -> vector<8x128xf32>
    %494 = vector.extract_strided_slice %491 {offsets = [0, 0], sizes = [8, 16], strides = [1, 1]} : vector<8x128xf32> to vector<8x16xf32>
    %495 = vector.extract_strided_slice %493 {offsets = [0, 0], sizes = [8, 16], strides = [1, 1]} : vector<8x128xf32> to vector<8x16xf32>
    %496 = arith.addf %494, %495 : vector<8x16xf32>
    %cst_179 = arith.constant 5.000000e-01 : f32
    %497 = vector.broadcast %cst_179 : f32 to vector<8x16xf32>
    %498 = arith.mulf %497, %496 : vector<8x16xf32>
    %499 = math.tanh %498 : vector<8x16xf32>
    %cst_180 = arith.constant 5.000000e-01 : f32
    %500 = vector.broadcast %cst_180 : f32 to vector<8x16xf32>
    %501 = arith.mulf %500, %499 : vector<8x16xf32>
    %cst_181 = arith.constant 5.000000e-01 : f32
    %502 = vector.broadcast %cst_181 : f32 to vector<8x16xf32>
    %503 = arith.addf %502, %501 : vector<8x16xf32>
    %504 = vector.extract_strided_slice %491 {offsets = [0, 16], sizes = [8, 16], strides = [1, 1]} : vector<8x128xf32> to vector<8x16xf32>
    %505 = vector.extract_strided_slice %493 {offsets = [0, 16], sizes = [8, 16], strides = [1, 1]} : vector<8x128xf32> to vector<8x16xf32>
    %506 = arith.addf %504, %505 : vector<8x16xf32>
    %cst_182 = arith.constant 5.000000e-01 : f32
    %507 = vector.broadcast %cst_182 : f32 to vector<8x16xf32>
    %508 = arith.mulf %507, %506 : vector<8x16xf32>
    %509 = math.tanh %508 : vector<8x16xf32>
    %cst_183 = arith.constant 5.000000e-01 : f32
    %510 = vector.broadcast %cst_183 : f32 to vector<8x16xf32>
    %511 = arith.mulf %510, %509 : vector<8x16xf32>
    %cst_184 = arith.constant 5.000000e-01 : f32
    %512 = vector.broadcast %cst_184 : f32 to vector<8x16xf32>
    %513 = arith.addf %512, %511 : vector<8x16xf32>
    %514 = vector.extract_strided_slice %491 {offsets = [0, 32], sizes = [8, 16], strides = [1, 1]} : vector<8x128xf32> to vector<8x16xf32>
    %515 = vector.extract_strided_slice %493 {offsets = [0, 32], sizes = [8, 16], strides = [1, 1]} : vector<8x128xf32> to vector<8x16xf32>
    %516 = vector.broadcast %21 : vector<1x16xf32> to vector<8x16xf32>
    %517 = arith.addf %515, %516 : vector<8x16xf32>
    %518 = arith.mulf %503, %517 : vector<8x16xf32>
    %519 = arith.addf %514, %518 : vector<8x16xf32>
    %520 = math.tanh %519 : vector<8x16xf32>
    %cst_185 = arith.constant 1.000000e+00 : f32
    %521 = vector.broadcast %cst_185 : f32 to vector<8x16xf32>
    %522 = arith.subf %521, %513 : vector<8x16xf32>
    %523 = arith.mulf %522, %520 : vector<8x16xf32>
    %524 = arith.mulf %513, %453 : vector<8x16xf32>
    %525 = arith.addf %523, %524 : vector<8x16xf32>
    %c48_186 = arith.constant 48 : index
    %c0_187 = arith.constant 0 : index
    %526 = vector.load %arg17[%c48_186, %c0_187] : memref<64x16xf32, #tpu.memory_space<vmem>>, vector<8x16xf32>
    tpu.vector_store %arg17[%c48_186, %c0_187], %490 {strides = array<i32>} : memref<64x16xf32, #tpu.memory_space<vmem>>, vector<8x16xf32>,
    %c8_188 = arith.constant 8 : index
    %c0_189 = arith.constant 0 : index
    %527 = vector.load %arg18[%c8_188, %c0_189] : memref<64x16xf32, #tpu.memory_space<vmem>>, vector<8x16xf32>
    tpu.vector_store %arg18[%c8_188, %c0_189], %525 {strides = array<i32>} : memref<64x16xf32, #tpu.memory_space<vmem>>, vector<8x16xf32>,
    %c56_190 = arith.constant 56 : index
    %c0_191 = arith.constant 0 : index
    %528 = vector.load %arg15[%c56_190, %c0_191] : memref<64x128xf32, #tpu.memory_space<vmem>>, vector<8x128xf32>
    %529 = arith.truncf %490 : vector<8x16xf32> to vector<8x16xbf16>
    %cst_192 = arith.constant dense<0.000000e+00> : vector<8x128xf32>
    %530 = tpu.matmul %529, %18, %cst_192 {dimension_numbers = #tpu.dot_dimension_numbers<[1], [0], [0], [1], [0, 0, 1, 1], [], []>} : vector<8x16xbf16>, vector<16x128xbf16>, vector<8x128xf32> -> vector<8x128xf32>
    %531 = vector.extract_strided_slice %528 {offsets = [0, 0], sizes = [8, 16], strides = [1, 1]} : vector<8x128xf32> to vector<8x16xf32>
    %532 = vector.extract_strided_slice %530 {offsets = [0, 0], sizes = [8, 16], strides = [1, 1]} : vector<8x128xf32> to vector<8x16xf32>
    %533 = arith.addf %531, %532 : vector<8x16xf32>
    %cst_193 = arith.constant 5.000000e-01 : f32
    %534 = vector.broadcast %cst_193 : f32 to vector<8x16xf32>
    %535 = arith.mulf %534, %533 : vector<8x16xf32>
    %536 = math.tanh %535 : vector<8x16xf32>
    %cst_194 = arith.constant 5.000000e-01 : f32
    %537 = vector.broadcast %cst_194 : f32 to vector<8x16xf32>
    %538 = arith.mulf %537, %536 : vector<8x16xf32>
    %cst_195 = arith.constant 5.000000e-01 : f32
    %539 = vector.broadcast %cst_195 : f32 to vector<8x16xf32>
    %540 = arith.addf %539, %538 : vector<8x16xf32>
    %541 = vector.extract_strided_slice %528 {offsets = [0, 16], sizes = [8, 16], strides = [1, 1]} : vector<8x128xf32> to vector<8x16xf32>
    %542 = vector.extract_strided_slice %530 {offsets = [0, 16], sizes = [8, 16], strides = [1, 1]} : vector<8x128xf32> to vector<8x16xf32>
    %543 = arith.addf %541, %542 : vector<8x16xf32>
    %cst_196 = arith.constant 5.000000e-01 : f32
    %544 = vector.broadcast %cst_196 : f32 to vector<8x16xf32>
    %545 = arith.mulf %544, %543 : vector<8x16xf32>
    %546 = math.tanh %545 : vector<8x16xf32>
    %cst_197 = arith.constant 5.000000e-01 : f32
    %547 = vector.broadcast %cst_197 : f32 to vector<8x16xf32>
    %548 = arith.mulf %547, %546 : vector<8x16xf32>
    %cst_198 = arith.constant 5.000000e-01 : f32
    %549 = vector.broadcast %cst_198 : f32 to vector<8x16xf32>
    %550 = arith.addf %549, %548 : vector<8x16xf32>
    %551 = vector.extract_strided_slice %528 {offsets = [0, 32], sizes = [8, 16], strides = [1, 1]} : vector<8x128xf32> to vector<8x16xf32>
    %552 = vector.extract_strided_slice %530 {offsets = [0, 32], sizes = [8, 16], strides = [1, 1]} : vector<8x128xf32> to vector<8x16xf32>
    %553 = vector.broadcast %20 : vector<1x16xf32> to vector<8x16xf32>
    %554 = arith.addf %552, %553 : vector<8x16xf32>
    %555 = arith.mulf %540, %554 : vector<8x16xf32>
    %556 = arith.addf %551, %555 : vector<8x16xf32>
    %557 = math.tanh %556 : vector<8x16xf32>
    %cst_199 = arith.constant 1.000000e+00 : f32
    %558 = vector.broadcast %cst_199 : f32 to vector<8x16xf32>
    %559 = arith.subf %558, %550 : vector<8x16xf32>
    %560 = arith.mulf %559, %557 : vector<8x16xf32>
    %561 = arith.mulf %550, %490 : vector<8x16xf32>
    %562 = arith.addf %560, %561 : vector<8x16xf32>
    %c0_200 = arith.constant 0 : index
    %c0_201 = arith.constant 0 : index
    %563 = vector.load %arg16[%c0_200, %c0_201] : memref<64x128xf32, #tpu.memory_space<vmem>>, vector<8x128xf32>
    %564 = arith.truncf %525 : vector<8x16xf32> to vector<8x16xbf16>
    %cst_202 = arith.constant dense<0.000000e+00> : vector<8x128xf32>
    %565 = tpu.matmul %564, %19, %cst_202 {dimension_numbers = #tpu.dot_dimension_numbers<[1], [0], [0], [1], [0, 0, 1, 1], [], []>} : vector<8x16xbf16>, vector<16x128xbf16>, vector<8x128xf32> -> vector<8x128xf32>
    %566 = vector.extract_strided_slice %563 {offsets = [0, 0], sizes = [8, 16], strides = [1, 1]} : vector<8x128xf32> to vector<8x16xf32>
    %567 = vector.extract_strided_slice %565 {offsets = [0, 0], sizes = [8, 16], strides = [1, 1]} : vector<8x128xf32> to vector<8x16xf32>
    %568 = arith.addf %566, %567 : vector<8x16xf32>
    %cst_203 = arith.constant 5.000000e-01 : f32
    %569 = vector.broadcast %cst_203 : f32 to vector<8x16xf32>
    %570 = arith.mulf %569, %568 : vector<8x16xf32>
    %571 = math.tanh %570 : vector<8x16xf32>
    %cst_204 = arith.constant 5.000000e-01 : f32
    %572 = vector.broadcast %cst_204 : f32 to vector<8x16xf32>
    %573 = arith.mulf %572, %571 : vector<8x16xf32>
    %cst_205 = arith.constant 5.000000e-01 : f32
    %574 = vector.broadcast %cst_205 : f32 to vector<8x16xf32>
    %575 = arith.addf %574, %573 : vector<8x16xf32>
    %576 = vector.extract_strided_slice %563 {offsets = [0, 16], sizes = [8, 16], strides = [1, 1]} : vector<8x128xf32> to vector<8x16xf32>
    %577 = vector.extract_strided_slice %565 {offsets = [0, 16], sizes = [8, 16], strides = [1, 1]} : vector<8x128xf32> to vector<8x16xf32>
    %578 = arith.addf %576, %577 : vector<8x16xf32>
    %cst_206 = arith.constant 5.000000e-01 : f32
    %579 = vector.broadcast %cst_206 : f32 to vector<8x16xf32>
    %580 = arith.mulf %579, %578 : vector<8x16xf32>
    %581 = math.tanh %580 : vector<8x16xf32>
    %cst_207 = arith.constant 5.000000e-01 : f32
    %582 = vector.broadcast %cst_207 : f32 to vector<8x16xf32>
    %583 = arith.mulf %582, %581 : vector<8x16xf32>
    %cst_208 = arith.constant 5.000000e-01 : f32
    %584 = vector.broadcast %cst_208 : f32 to vector<8x16xf32>
    %585 = arith.addf %584, %583 : vector<8x16xf32>
    %586 = vector.extract_strided_slice %563 {offsets = [0, 32], sizes = [8, 16], strides = [1, 1]} : vector<8x128xf32> to vector<8x16xf32>
    %587 = vector.extract_strided_slice %565 {offsets = [0, 32], sizes = [8, 16], strides = [1, 1]} : vector<8x128xf32> to vector<8x16xf32>
    %588 = vector.broadcast %21 : vector<1x16xf32> to vector<8x16xf32>
    %589 = arith.addf %587, %588 : vector<8x16xf32>
    %590 = arith.mulf %575, %589 : vector<8x16xf32>
    %591 = arith.addf %586, %590 : vector<8x16xf32>
    %592 = math.tanh %591 : vector<8x16xf32>
    %cst_209 = arith.constant 1.000000e+00 : f32
    %593 = vector.broadcast %cst_209 : f32 to vector<8x16xf32>
    %594 = arith.subf %593, %585 : vector<8x16xf32>
    %595 = arith.mulf %594, %592 : vector<8x16xf32>
    %596 = arith.mulf %585, %525 : vector<8x16xf32>
    %597 = arith.addf %595, %596 : vector<8x16xf32>
    %c56_210 = arith.constant 56 : index
    %c0_211 = arith.constant 0 : index
    %598 = vector.load %arg17[%c56_210, %c0_211] : memref<64x16xf32, #tpu.memory_space<vmem>>, vector<8x16xf32>
    tpu.vector_store %arg17[%c56_210, %c0_211], %562 {strides = array<i32>} : memref<64x16xf32, #tpu.memory_space<vmem>>, vector<8x16xf32>,
    %c0_212 = arith.constant 0 : index
    %c0_213 = arith.constant 0 : index
    %599 = vector.load %arg18[%c0_212, %c0_213] : memref<64x16xf32, #tpu.memory_space<vmem>>, vector<8x16xf32>
    tpu.vector_store %arg18[%c0_212, %c0_213], %597 {strides = array<i32>} : memref<64x16xf32, #tpu.memory_space<vmem>>, vector<8x16xf32>,
    %c0_214 = arith.constant 0 : index
    %c0_215 = arith.constant 0 : index
    %600 = vector.load %arg17[%c0_214, %c0_215] : memref<64x16xf32, #tpu.memory_space<vmem>>, vector<64x16xf32>
    %601 = arith.truncf %600 : vector<64x16xf32> to vector<64x16xbf16>
    %c0_216 = arith.constant 0 : index
    %c0_217 = arith.constant 0 : index
    %602 = vector.load %arg11[%c0_216, %c0_217] : memref<16x128xbf16, #tpu.memory_space<vmem>>, vector<16x128xbf16>
    %cst_218 = arith.constant dense<0.000000e+00> : vector<64x128xf32>
    %603 = tpu.matmul %601, %602, %cst_218 {dimension_numbers = #tpu.dot_dimension_numbers<[1], [0], [0], [1], [0, 0, 1, 1], [], []>} : vector<64x16xbf16>, vector<16x128xbf16>, vector<64x128xf32> -> vector<64x128xf32>
    %c0_219 = arith.constant 0 : index
    %c0_220 = arith.constant 0 : index
    %604 = vector.load %arg18[%c0_219, %c0_220] : memref<64x16xf32, #tpu.memory_space<vmem>>, vector<64x16xf32>
    %605 = arith.truncf %604 : vector<64x16xf32> to vector<64x16xbf16>
    %c0_221 = arith.constant 0 : index
    %c0_222 = arith.constant 0 : index
    %606 = vector.load %arg12[%c0_221, %c0_222] : memref<16x128xbf16, #tpu.memory_space<vmem>>, vector<16x128xbf16>
    %cst_223 = arith.constant dense<0.000000e+00> : vector<64x128xf32>
    %607 = tpu.matmul %605, %606, %cst_223 {dimension_numbers = #tpu.dot_dimension_numbers<[1], [0], [0], [1], [0, 0, 1, 1], [], []>} : vector<64x16xbf16>, vector<16x128xbf16>, vector<64x128xf32> -> vector<64x128xf32>
    %608 = arith.addf %603, %607 : vector<64x128xf32>
    %c0_224 = arith.constant 0 : index
    %c0_225 = arith.constant 0 : index
    %609 = vector.load %arg13[%c0_224, %c0_225] : memref<1x128xf32, #tpu.memory_space<vmem>>, vector<1x128xf32>
    %610 = vector.broadcast %609 : vector<1x128xf32> to vector<64x128xf32>
    %611 = arith.addf %608, %610 : vector<64x128xf32>
    %c0_226 = arith.constant 0 : index
    %c0_227 = arith.constant 0 : index
    %612 = vector.load %arg14[%c0_226, %c0_227] : memref<64x128xf32, #tpu.memory_space<vmem>>, vector<64x128xf32>
    tpu.vector_store %arg14[%c0_226, %c0_227], %611 {strides = array<i32>} : memref<64x128xf32, #tpu.memory_space<vmem>>, vector<64x128xf32>,
    return
  }
}

</mosaic_0001>

<bundles_post_ra>
// kernel: tpu_custom_call.1
= control target key start
LH: loop header
LB: loop body
LE: loop exit
PB: predicated region body
PF: predicated region fallthrough
CT: control target
= control target key end

     0   :  { %vm105_vm0 = vcmask 1045504   ;;  %vm92_vm1 = vcmask 97280   ;;  %s2796_s0 = inlined_call_operand.vmem [shape: bf16[64,12], index: 0, kind: input, shape index: {}]   ;;  %s2797_s1 = inlined_call_operand.vmem [shape: f32[64,32], index: 1, kind: input, shape index: {}]   ;;  %s2798_s2 = inlined_call_operand.vmem [shape: bf16[12,32], index: 2, kind: input, shape index: {}]   ;;  %s2799_s3 = inlined_call_operand.vmem [shape: bf16[32,128], index: 3, kind: input, shape index: {}]   ;;  %s2800_s4 = inlined_call_operand.vmem [shape: bf16[16,128], index: 4, kind: input, shape index: {}]   ;;  %s2801_s5 = inlined_call_operand.vmem [shape: f32[1,128], index: 5, kind: input, shape index: {}]   ;;  %s2802_s6 = inlined_call_operand.vmem [shape: f32[1,16], index: 6, kind: input, shape index: {}]   ;;  %s2803_s7 = inlined_call_operand.vmem [shape: bf16[32,128], index: 7, kind: input, shape index: {}]   ;;  %s2804_s8 = inlined_call_operand.vmem [shape: bf16[16,128], index: 8, kind: input, shape index: {}]   ;;  %s2805_s9 = inlined_call_operand.vmem [shape: f32[1,128], index: 9, kind: input, shape index: {}]   ;;  %s2806_s10 = inlined_call_operand.vmem [shape: f32[1,16], index: 10, kind: input, shape index: {}]   ;;  %s2807_s11 = inlined_call_operand.vmem [shape: bf16[16,128], index: 11, kind: input, shape index: {}]   ;;  %s2808_s12 = inlined_call_operand.vmem [shape: bf16[16,128], index: 12, kind: input, shape index: {}]   ;;  %s2809_s13 = inlined_call_operand.vmem [shape: f32[1,128], index: 13, kind: input, shape index: {}]   ;;  %s2810_s14 = inlined_call_operand.hbm [shape: f32[64,128], index: 14, kind: output, shape index: {}]  }
   0x1   :  { %v2167_v0 = vld [vmem:[%s2798_s2] sm:$0x3f]   ;;  %v2169_v3 = vld [vmem:[%s2796_s0 + $0x8] sm:$0xff]   ;;  %v2170_v4 = vld [vmem:[%s2796_s0 + $0x10] sm:$0xff]  }
   0x2   :  { %v2168_v1 = vld [vmem:[%s2796_s0] sm:$0xff]   ;;  %2157 = vmatprep.subr.msk.bf16.mxu1 %vm105_vm0, %v2167_v0  ;;  %v107_v2 = vsel %vm105_vm0, %v2167_v0, 0  ;;  %v2171_v6 = vld [vmem:[%s2796_s0 + $0x18] sm:$0xff]  }
   0x3   :  { %2000 = vmatpush3.bf16.msra.mxu1 %v107_v2  ;;  %2001 = vmatprep.mubr.msk.bf16.mxu1 %vm92_vm1, %v2168_v1  ;;  %v2172_v5 = vld [vmem:[%s2799_s3] sm:$0xff]  }
   0x4   :  { %2009 = vmatprep.subr.bf16.mxu1 %v2172_v5 }
   0x6   :  { %2002 = vmatmul.mubr.msk.bf16.vlgmr.msra.gmra.mrb[0].mxu1 %vm92_vm1, %v2169_v3 }
   0x7   :  { %2005 = vmatprep.mubr.msk.bf16.mxu1 %vm92_vm1, %v2170_v4  ;;  %2010 = vmatpush3.bf16.msra.mxu1 %v2172_v5 }
   0x8   :  { %19 = vsyncpa [#allocation7], 0  ;;  %v2174_v7 = vld [vmem:[%s2803_s7] sm:$0xff]   ;;  %v2173_v8 = vld [vmem:[%s2799_s3 + $0x8] sm:$0xff]   ;;  %v2268_v10 = vmov 0.0   ;;  %s2269_s3 = smov 32  }
   0x9   :  { %2021 = vmatprep.subr.bf16.mxu0 %v2174_v7  ;;  %2011 = vmatprep.subr.bf16.mxu1 %v2173_v8  ;;  %v2175_v9 = vld [vmem:[%s2803_s7 + $0x8] sm:$0xff]   ;;  %v1914_v11 = vld [vmem:[%s2806_s10] ss:$0 sm:$0xff]  ;;  %v61_v13 = vld [vmem:[%s2797_s1 + $0x10] sm:$0xff]  ;;  %vm201_vm2 = vcmask 261120   ;;  %vm2270_vm3 = vmmov 0  }
   0xa   :  { %2022 = vmatpush3.bf16.msra.mxu0 %v2174_v7  ;;  %530 = vrot.lane.b32.xlu0 %v1914_v11, %s2269_s3  ;;  %v1912_v12 = vld [vmem:[%s2802_s6] ss:$0 sm:$0xff]  ;;  %v62_v15 = vld [vmem:[%s2797_s1 + $0x18] sm:$0xff]  ;;  %v60_v18 = vld [vmem:[%s2797_s1 + $0x8] sm:$0xff]  ;;  %v2271_v43 = vmov 0   ;;  %vm396_vm4 = vcmask 130048  }
   0xb   :  { %2012 = vmatpush3.bf16.msra.mxu1 %v2173_v8  ;;  %2023 = vmatprep.subr.bf16.mxu0 %v2175_v9  ;;  %v59_v17 = vld [vmem:[%s2797_s1] sm:$0xff]  ;;  %v65_v28 = vld [vmem:[%s2797_s1 + $0x30] sm:$0xff]  ;;  %v66_v30 = vld [vmem:[%s2797_s1 + $0x38] sm:$0xff]  ;;  %s2274_s19 = smov [#allocation6]  }
   0xc   :  { %2033 = vmatprep.subr.bf16.mxu1 %v2268_v10  ;;  %v2404_v27 = vld [vmem:[%s2800_s4] sm:$0xff]   ;;  %v64_v33 = vld [vmem:[%s2797_s1 + $0x28] sm:$0xff]  ;;  %s1877_s10 = sshll.u32 %s2274_s19, 4  ;;  %s1878_s10 = int_to_ptr.vmem [resolvable:$true] %s1877_s10 }
   0xd   :  { %v63_v32 = vld [vmem:[%s2797_s1 + $0x20] sm:$0xff]  ;;  %p2249_p1 = scmp.lt.s32.totalorder %s1878_s10, %s1878_s10 }
   0xe   :  { %2006 = vmatmul.mubr.msk.bf16.gmra.mrb[4].mxu1 %vm92_vm1, %v2171_v6  ;;  %2024 = vmatpush3.bf16.msra.mxu0 %v2175_v9  ;;  %v2437_v42 = vld [vmem:[%s2804_s8] sm:$0xff]  }
   0xf   :  { %2045 = vmatprep.subr.bf16.mxu0 %v2268_v10  ;;  %450 = vrot.lane.b32.xlu0 %v1912_v12, %s2269_s3  ;;  %v1897_v44 = vld [vmem:[%s2801_s5] ss:$0 sm:$0xff]  ;;  %s2272_s5 = smov 96  }
  0x10   :  { %v1904_v45 = vld [vmem:[%s2805_s9] ss:$0 sm:$0xff]  ;;  %s2273_s9 = smov 112  }
  0xd9   :  { %v2003_v14 = vpop.f32.mrb[0].mxu1 }
  0xda   :  { %v143_v16 = vpop.f32.mrb[1].mxu1  ;;  %v152_v20 = vadd.f32 %v2003_v14, %v61_v13 }
  0xdb   :  { %v2004_v19 = vpop.f32.mrb[2].mxu1  ;;  %v144_v23 = vadd.f32 %v143_v16, %v59_v17  ;;  %v2481_v17 = vpop.permute.xlu0 %530 }
  0xdc   :  { %v155_v21 = vadd.f32 %v2004_v19, %v62_v15  ;;  %v146_v22 = vpop.f32.mrb[3].mxu1 }
  0xdd   :  { %v147_v24 = vadd.f32 %v146_v22, %v60_v18 }
  0xde   :  { %v175_v25 = vpack.c.bf16 %v155_v21, %v152_v20 }
  0xdf   :  { %v174_v26 = vpack.c.bf16 %v147_v24, %v144_v23  ;;  %v2484_v21 = vpop.permute.xlu0 %450 }
  0xe1   :  { %v2007_v29 = vpop.f32.mrb[4].mxu1  ;;  %2013 = vmatprep.mubr.msk.bf16.mxu1 %vm201_vm2, %v174_v26  ;;  %2025 = vmatprep.mubr.msk.bf16.mxu0 %vm201_vm2, %v174_v26 }
  0xe2   :  { %v159_v31 = vpop.f32.mrb[5].mxu1  ;;  %2014 = vmatmul.mubr.msk.bf16.vlgmr.msra.gmra.mrb[8].mxu1 %vm201_vm2, %v175_v25  ;;  %2026 = vmatmul.mubr.msk.bf16.vlgmr.msra.gmra.mrb[0].mxu0 %vm201_vm2, %v175_v25  ;;  %v168_v35 = vadd.f32 %v2007_v29, %v65_v28 }
  0xe3   :  { %2034 = vmatpush3.bf16.msra.mxu1 %v2404_v27  ;;  %v2008_v34 = vpop.f32.mrb[6].mxu1  ;;  %2046 = vmatpush3.bf16.msra.mxu0 %v2404_v27  ;;  %v160_v38 = vadd.f32 %v159_v31, %v63_v32 }
  0xe4   :  { %v171_v36 = vadd.f32 %v2008_v34, %v66_v30  ;;  %v162_v37 = vpop.f32.mrb[7].mxu1  ;;  %2039 = vmatprep.subr.bf16.mxu1 %v2268_v10  ;;  %2057 = vmatprep.subr.bf16.mxu0 %v2268_v10 }
  0xe5   :  { %v163_v39 = vadd.f32 %v162_v37, %v64_v33 }
  0xe6   :  { %v177_v40 = vpack.c.bf16 %v171_v36, %v168_v35 }
  0xe7   :  { %v176_v41 = vpack.c.bf16 %v163_v39, %v160_v38 }
  0xe9   :  { %2017 = vmatprep.mubr.msk.bf16.mxu1 %vm201_vm2, %v176_v41  ;;  %2029 = vmatprep.mubr.msk.bf16.mxu0 %vm201_vm2, %v176_v41 }
  0xea   :  { %2018 = vmatmul.mubr.msk.bf16.gmra.mrb[12].mxu1 %vm201_vm2, %v177_v40  ;;  %2030 = vmatmul.mubr.msk.bf16.gmra.mrb[4].mxu0 %vm201_vm2, %v177_v40 }
  0xeb   :  { %2035 = vmatprep.mubr.msk.bf16.mxu1 %vm2270_vm3, %v2268_v10  ;;  %2047 = vmatprep.mubr.msk.bf16.mxu0 %vm2270_vm3, %v2268_v10 }
  0xf2   :  { %2036 = vmatmul.mubr.bf16.vlgmr.msra.gmra.mrb[16].mxu1 %v2271_v43 }
  0xf3   :  { %2040 = vmatpush3.bf16.msra.mxu1 %v2437_v42  ;;  %2041 = vmatprep.mubr.msk.bf16.mxu1 %vm2270_vm3, %v2268_v10 }
  0xf4   :  { %2051 = vmatprep.subr.bf16.mxu1 %v2268_v10 }
  0xfa   :  { %2042 = vmatmul.mubr.bf16.vlgmr.msra.gmra.mrb[20].mxu1 %v2271_v43 }
  0xfb   :  { %2052 = vmatpush3.bf16.msra.mxu1 %v2437_v42  ;;  %2053 = vmatprep.mubr.msk.bf16.mxu1 %vm2270_vm3, %v2268_v10 }
  0xfc   :  { %2063 = vmatprep.subr.bf16.mxu1 %v2268_v10 }
 0x1b5   :  { %v2015_v46 = vpop.f32.mrb[8].mxu1  ;;  %v2027_v47 = vpop.f32.mrb[0].mxu0 }
 0x1b6   :  { %v2453_v48 = vadd.f32 %v2015_v46, %v1897_v44  ;;  %v2455_v49 = vadd.f32 %v2027_v47, %v1904_v45  ;;  %v248_v50 = vpop.f32.mrb[9].mxu1  ;;  %v344_v51 = vpop.f32.mrb[1].mxu0 }
 0x1b7   :  { %v2457_v52 = vadd.f32 %v1904_v45, %v344_v51  ;;  %v2016_v53 = vpop.f32.mrb[10].mxu1  ;;  %v2028_v54 = vpop.f32.mrb[2].mxu0  ;;  %v249_v28 = vadd.f32 %v1897_v44, %v248_v50 }
 0x1b8   :  { %v2459_v55 = vadd.f32 %v2016_v53, %v1897_v44  ;;  %v2461_v56 = vadd.f32 %v2028_v54, %v1904_v45  ;;  %v251_v57 = vpop.f32.mrb[11].mxu1  ;;  %v347_v58 = vpop.f32.mrb[3].mxu0 }
 0x1b9   :  { %v2463_v59 = vadd.f32 %v1897_v44, %v251_v57  ;;  %v2465_v60 = vadd.f32 %v1904_v45, %v347_v58 }
 0x1bd   :  { %v2019_v61 = vpop.f32.mrb[12].mxu1  ;;  %v2031_v62 = vpop.f32.mrb[4].mxu0 }
 0x1be   :  { %v2467_v63 = vadd.f32 %v2019_v61, %v1897_v44  ;;  %v2469_v0 = vadd.f32 %v2031_v62, %v1904_v45  ;;  %v264_v1 = vpop.f32.mrb[13].mxu1  ;;  %v360_v2 = vpop.f32.mrb[5].mxu0 }
 0x1bf   :  { %v2471_v3 = vadd.f32 %v1897_v44, %v264_v1  ;;  %v2473_v4 = vadd.f32 %v1904_v45, %v360_v2  ;;  %v2020_v5 = vpop.f32.mrb[14].mxu1  ;;  %v2032_v6 = vpop.f32.mrb[6].mxu0 }
 0x1c0   :  { %v2475_v7 = vadd.f32 %v2020_v5, %v1897_v44  ;;  %v267_v8 = vpop.f32.mrb[15].mxu1  ;;  %v363_v9 = vpop.f32.mrb[7].mxu0  ;;  %v372_v25 = vadd.f32 %v2032_v6, %v1904_v45 }
 0x1c1   :  { %v2477_v11 = vadd.f32 %v1897_v44, %v267_v8  ;;  %v2479_v12 = vadd.f32 %v1904_v45, %v363_v9 }
 0x1c5   :  { %v434_v13 = vpop.f32.mrb[16].mxu1 }
 0x1c6   :  { %v2037_v14 = vpop.f32.mrb[17].mxu1  ;;  %v453_v24 = vadd.f32 %v2484_v21, %v434_v13  ;;  %v440_v29 = vadd.f32 %v434_v13, %v249_v28 }
 0x1c7   :  { %v437_v15 = vpop.f32.mrb[18].mxu1 }
 0x1c8   :  { %v2038_v16 = vpop.f32.mrb[19].mxu1  ;;  %v441_v31 = vmul.f32 0.5, %v440_v29 }
 0x1cd   :  { %v514_v18 = vpop.f32.mrb[20].mxu1 }
 0x1ce   :  { %v2043_v19 = vpop.f32.mrb[21].mxu1  ;;  %v533_v20 = vadd.f32 %v2481_v17, %v514_v18  ;;  %v520_v26 = vadd.f32 %v514_v18, %v372_v25 }
 0x1cf   :  { %v517_v22 = vpop.f32.mrb[22].mxu1 }
 0x1d0   :  { %535 = vrot.lane.b32.xlu1 %v533_v20, %s2272_s5  ;;  %v2044_v23 = vpop.f32.mrb[23].mxu1  ;;  %v521_v30 = vmul.f32 0.5, %v520_v26 }
 0x1d2   :  { %2180 = vtanh.f32 %v521_v30 }
 0x1d3   :  { %2182 = vtanh.f32 %v441_v31 }
 0x1d4   :  { %455 = vrot.lane.b32.xlu1 %v453_v24, %s2272_s5 }
 0x1dc   :  { %v2181_v32 = vpop.eup %2180 }
 0x1dd   :  { %v523_v33 = vmul.f32 0.5, %v2181_v32  ;;  %v2183_v34 = vpop.eup %2182 }
 0x1de   :  { %v443_v36 = vmul.f32 0.5, %v2183_v34 }
 0x1df   :  { %v524_v35 = vadd.f32 0.5, %v523_v33 }
 0x1e0   :  { %v444_v39 = vadd.f32 0.5, %v443_v36 }
 0x1e1   :  { %v545_v51 = vsub.f32 1.0, %v524_v35  ;;  %v551_v54 = vmul.f32 0.0, %v524_v35 }
 0x1e2   :  { %v465_v61 = vsub.f32 1.0, %v444_v39  ;;  %v471_v1 = vmul.f32 0.0, %v444_v39 }
 0x242   :  { %v536_v37 = vpop.permute.xlu1 %535 }
 0x243   :  { %v538_v38 = vmul.f32 %v536_v37, %v524_v35 }
 0x245   :  { %540 = vrot.lane.b32.xlu0 %v538_v38, %s2269_s3 }
 0x246   :  { %v456_v40 = vpop.permute.xlu1 %455 }
 0x247   :  { %v458_v41 = vmul.f32 %v456_v40, %v444_v39 }
 0x249   :  { %460 = vrot.lane.b32.xlu1 %v458_v41, %s2269_s3 }
 0x2b7   :  { %v541_v43 = vpop.permute.xlu0 %540 }
 0x2b8   :  { %v543_v44 = vadd.f32 %v541_v43, %v372_v25 }
 0x2ba   :  { %2184 = vtanh.f32 %v543_v44 }
 0x2bb   :  { %v461_v45 = vpop.permute.xlu1 %460 }
 0x2bc   :  { %v463_v46 = vadd.f32 %v461_v45, %v249_v28 }
 0x2be   :  { %2186 = vtanh.f32 %v463_v46 }
 0x2c4   :  { %v2185_v47 = vpop.eup %2184 }
 0x2c5   :  { %547 = vrot.lane.b32.xlu0 %v2185_v47, %s2273_s9 }
 0x2c8   :  { %v2187_v50 = vpop.eup %2186 }
 0x2c9   :  { %467 = vrot.lane.b32.xlu1 %v2187_v50, %s2273_s9 }
 0x337   :  { %v548_v53 = vpop.permute.xlu0 %547 }
 0x338   :  { %v550_v57 = vmul.f32 %v548_v53, %v545_v51 }
 0x33a   :  { %v2493_v58 = vadd.f32 %v551_v54, %v550_v57 }
 0x33b   :  { %v468_v62 = vpop.permute.xlu1 %467 }
 0x33c   :  { %v470_v2 = vmul.f32 %v468_v62, %v465_v61  ;;  %v637_v5 = vpack.c.bf16 %v2493_v58, %v2493_v58 }
 0x33e   :  { %v2497_v6 = vadd.f32 %v471_v1, %v470_v2  ;;  %639 = vrot.lane.b32.xlu0 %v637_v5, %s2273_s9 }
 0x340   :  { %v564_v8 = vpack.c.bf16 %v2497_v6, %v2497_v6 }
 0x342   :  { %566 = vrot.lane.b32.xlu1 %v564_v8, %s2273_s9 }
 0x3b0   :  { %v640_v9 = vpop.permute.xlu0 %639 }
 0x3b1   :  { %2054 = vmatmul.mubr.msk.bf16.vlgmr.msra.gmra.mrb[24].mxu1 %vm396_vm4, %v640_v9 }
 0x3b2   :  { %2064 = vmatpush3.bf16.msra.mxu1 %v2437_v42  ;;  %2065 = vmatprep.mubr.msk.bf16.mxu1 %vm2270_vm3, %v2268_v10 }
 0x3b3   :  { %2075 = vmatprep.subr.bf16.mxu1 %v2268_v10 }
 0x3b4   :  { %v567_v13 = vpop.permute.xlu1 %566 }
 0x3b5   :  { %2048 = vmatmul.mubr.msk.bf16.vlgmr.msra.gmra.mrb[8].mxu0 %vm396_vm4, %v567_v13 }
 0x3b6   :  { %2058 = vmatpush3.bf16.msra.mxu0 %v2404_v27  ;;  %2059 = vmatprep.mubr.msk.bf16.mxu0 %vm2270_vm3, %v2268_v10 }
 0x3b7   :  { %2069 = vmatprep.subr.bf16.mxu0 %v2268_v10 }
 0x484   :  { %v678_v14 = vpop.f32.mrb[24].mxu1 }
 0x485   :  { %v689_v15 = vadd.f32 %v678_v14, %v2481_v17  ;;  %v2055_v16 = vpop.f32.mrb[25].mxu1  ;;  %v684_v26 = vadd.f32 %v678_v14, %v2469_v0 }
 0x486   :  { %v681_v18 = vpop.f32.mrb[26].mxu1 }
 0x487   :  { %691 = vrot.lane.b32.xlu0 %v689_v15, %s2272_s5  ;;  %v2056_v19 = vpop.f32.mrb[27].mxu1  ;;  %v685_v28 = vmul.f32 0.5, %v684_v26 }
 0x488   :  { %v605_v20 = vpop.f32.mrb[8].mxu0 }
 0x489   :  { %v616_v22 = vadd.f32 %v605_v20, %v2484_v21  ;;  %v2049_v23 = vpop.f32.mrb[9].mxu0  ;;  %v611_v29 = vadd.f32 %v605_v20, %v2463_v59  ;;  %2188 = vtanh.f32 %v685_v28 }
 0x48a   :  { %v608_v24 = vpop.f32.mrb[10].mxu0 }
 0x48b   :  { %618 = vrot.lane.b32.xlu1 %v616_v22, %s2272_s5  ;;  %v2050_v25 = vpop.f32.mrb[11].mxu0  ;;  %v612_v30 = vmul.f32 0.5, %v611_v29 }
 0x48d   :  { %2190 = vtanh.f32 %v612_v30 }
 0x493   :  { %v2189_v31 = vpop.eup %2188 }
 0x494   :  { %v687_v32 = vmul.f32 0.5, %v2189_v31 }
 0x496   :  { %v688_v34 = vadd.f32 0.5, %v687_v32 }
 0x497   :  { %v2191_v33 = vpop.eup %2190 }
 0x498   :  { %v614_v35 = vmul.f32 0.5, %v2191_v33  ;;  %v701_v50 = vsub.f32 1.0, %v688_v34  ;;  %v707_v53 = vmul.f32 %v688_v34, %v2493_v58 }
 0x49a   :  { %v615_v38 = vadd.f32 0.5, %v614_v35 }
 0x49c   :  { %v628_v61 = vsub.f32 1.0, %v615_v38  ;;  %v634_v62 = vmul.f32 %v615_v38, %v2497_v6 }
 0x4f9   :  { %v692_v36 = vpop.permute.xlu0 %691 }
 0x4fa   :  { %v694_v37 = vmul.f32 %v692_v36, %v688_v34 }
 0x4fc   :  { %696 = vrot.lane.b32.xlu0 %v694_v37, %s2269_s3 }
 0x4fd   :  { %v619_v39 = vpop.permute.xlu1 %618 }
 0x4fe   :  { %v621_v40 = vmul.f32 %v619_v39, %v615_v38 }
 0x500   :  { %623 = vrot.lane.b32.xlu1 %v621_v40, %s2269_s3 }
 0x56e   :  { %v697_v41 = vpop.permute.xlu0 %696 }
 0x56f   :  { %v699_v43 = vadd.f32 %v697_v41, %v2469_v0 }
 0x571   :  { %2192 = vtanh.f32 %v699_v43 }
 0x572   :  { %v624_v44 = vpop.permute.xlu1 %623 }
 0x573   :  { %v626_v45 = vadd.f32 %v624_v44, %v2463_v59 }
 0x575   :  { %2194 = vtanh.f32 %v626_v45 }
 0x57b   :  { %v2193_v46 = vpop.eup %2192 }
 0x57c   :  { %703 = vrot.lane.b32.xlu0 %v2193_v46, %s2273_s9 }
 0x57f   :  { %v2195_v47 = vpop.eup %2194 }
 0x580   :  { %630 = vrot.lane.b32.xlu1 %v2195_v47, %s2273_s9 }
 0x5ee   :  { %v704_v51 = vpop.permute.xlu0 %703 }
 0x5ef   :  { %v706_v54 = vmul.f32 %v704_v51, %v701_v50 }
 0x5f1   :  { %v2526_v57 = vadd.f32 %v707_v53, %v706_v54 }
 0x5f2   :  { %v631_v0 = vpop.permute.xlu1 %630 }
 0x5f3   :  { %v633_v1 = vmul.f32 %v631_v0, %v628_v61  ;;  %v793_v59 = vpack.c.bf16 %v2526_v57, %v2526_v57 }
 0x5f5   :  { %v2531_v2 = vadd.f32 %v634_v62, %v633_v1  ;;  %795 = vrot.lane.b32.xlu0 %v793_v59, %s2273_s9 }
 0x5f7   :  { %v720_v5 = vpack.c.bf16 %v2531_v2, %v2531_v2 }
 0x5f9   :  { %722 = vrot.lane.b32.xlu1 %v720_v5, %s2273_s9 }
 0x667   :  { %v796_v8 = vpop.permute.xlu0 %795 }
 0x668   :  { %2066 = vmatmul.mubr.msk.bf16.vlgmr.msra.gmra.mrb[28].mxu1 %vm396_vm4, %v796_v8 }
 0x669   :  { %2076 = vmatpush3.bf16.msra.mxu1 %v2437_v42  ;;  %2077 = vmatprep.mubr.msk.bf16.mxu1 %vm2270_vm3, %v2268_v10 }
 0x66a   :  { %2087 = vmatprep.subr.bf16.mxu1 %v2268_v10 }
 0x66b   :  { %v723_v9 = vpop.permute.xlu1 %722 }
 0x66c   :  { %2060 = vmatmul.mubr.msk.bf16.vlgmr.msra.gmra.mrb[12].mxu0 %vm396_vm4, %v723_v9 }
 0x66d   :  { %2070 = vmatpush3.bf16.msra.mxu0 %v2404_v27  ;;  %2071 = vmatprep.mubr.msk.bf16.mxu0 %vm2270_vm3, %v2268_v10 }
 0x66e   :  { %2081 = vmatprep.subr.bf16.mxu0 %v2268_v10 }
 0x73b   :  { %v834_v13 = vpop.f32.mrb[28].mxu1 }
 0x73c   :  { %v845_v14 = vadd.f32 %v834_v13, %v2481_v17  ;;  %v2067_v15 = vpop.f32.mrb[29].mxu1  ;;  %v840_v25 = vadd.f32 %v834_v13, %v2479_v12 }
 0x73d   :  { %v837_v16 = vpop.f32.mrb[30].mxu1 }
 0x73e   :  { %847 = vrot.lane.b32.xlu0 %v845_v14, %s2272_s5  ;;  %v2068_v18 = vpop.f32.mrb[31].mxu1  ;;  %v841_v26 = vmul.f32 0.5, %v840_v25 }
 0x73f   :  { %v761_v19 = vpop.f32.mrb[12].mxu0 }
 0x740   :  { %v772_v20 = vadd.f32 %v761_v19, %v2484_v21  ;;  %v2061_v22 = vpop.f32.mrb[13].mxu0  ;;  %v767_v28 = vadd.f32 %v761_v19, %v2453_v48  ;;  %2196 = vtanh.f32 %v841_v26 }
 0x741   :  { %v764_v23 = vpop.f32.mrb[14].mxu0 }
 0x742   :  { %774 = vrot.lane.b32.xlu1 %v772_v20, %s2272_s5  ;;  %v2062_v24 = vpop.f32.mrb[15].mxu0  ;;  %v768_v29 = vmul.f32 0.5, %v767_v28 }
 0x744   :  { %2198 = vtanh.f32 %v768_v29 }
 0x74a   :  { %v2197_v30 = vpop.eup %2196 }
 0x74b   :  { %v843_v31 = vmul.f32 0.5, %v2197_v30 }
 0x74d   :  { %v844_v33 = vadd.f32 0.5, %v843_v31 }
 0x74e   :  { %v2199_v32 = vpop.eup %2198 }
 0x74f   :  { %v770_v34 = vmul.f32 0.5, %v2199_v32  ;;  %v857_v47 = vsub.f32 1.0, %v844_v33  ;;  %v863_v51 = vmul.f32 %v844_v33, %v2526_v57 }
 0x751   :  { %v771_v37 = vadd.f32 0.5, %v770_v34 }
 0x753   :  { %v784_v61 = vsub.f32 1.0, %v771_v37  ;;  %v790_v0 = vmul.f32 %v771_v37, %v2531_v2 }
 0x7b0   :  { %v848_v35 = vpop.permute.xlu0 %847 }
 0x7b1   :  { %v850_v36 = vmul.f32 %v848_v35, %v844_v33 }
 0x7b3   :  { %852 = vrot.lane.b32.xlu0 %v850_v36, %s2269_s3 }
 0x7b4   :  { %v775_v38 = vpop.permute.xlu1 %774 }
 0x7b5   :  { %v777_v39 = vmul.f32 %v775_v38, %v771_v37 }
 0x7b7   :  { %779 = vrot.lane.b32.xlu1 %v777_v39, %s2269_s3 }
 0x825   :  { %v853_v40 = vpop.permute.xlu0 %852 }
 0x826   :  { %v855_v41 = vadd.f32 %v853_v40, %v2479_v12 }
 0x828   :  { %2200 = vtanh.f32 %v855_v41 }
 0x829   :  { %v780_v43 = vpop.permute.xlu1 %779 }
 0x82a   :  { %v782_v44 = vadd.f32 %v780_v43, %v2453_v48 }
 0x82c   :  { %2202 = vtanh.f32 %v782_v44 }
 0x832   :  { %v2201_v45 = vpop.eup %2200 }
 0x833   :  { %859 = vrot.lane.b32.xlu0 %v2201_v45, %s2273_s9 }
 0x836   :  { %v2203_v46 = vpop.eup %2202 }
 0x837   :  { %786 = vrot.lane.b32.xlu1 %v2203_v46, %s2273_s9 }
 0x8a5   :  { %v860_v50 = vpop.permute.xlu0 %859 }
 0x8a6   :  { %v862_v53 = vmul.f32 %v860_v50, %v857_v47 }
 0x8a8   :  { %v2560_v54 = vadd.f32 %v863_v51, %v862_v53 }
 0x8a9   :  { %v787_v12 = vpop.permute.xlu1 %786 }
 0x8aa   :  { %v789_v62 = vmul.f32 %v787_v12, %v784_v61  ;;  %v949_v48 = vpack.c.bf16 %v2560_v54, %v2560_v54 }
 0x8ac   :  { %v2565_v1 = vadd.f32 %v790_v0, %v789_v62  ;;  %951 = vrot.lane.b32.xlu0 %v949_v48, %s2273_s9 }
 0x8ae   :  { %v876_v59 = vpack.c.bf16 %v2565_v1, %v2565_v1 }
 0x8b0   :  { %878 = vrot.lane.b32.xlu1 %v876_v59, %s2273_s9 }
 0x91e   :  { %v952_v5 = vpop.permute.xlu0 %951 }
 0x91f   :  { %2078 = vmatmul.mubr.msk.bf16.vlgmr.msra.gmra.mrb[32].mxu1 %vm396_vm4, %v952_v5 }
 0x920   :  { %2088 = vmatpush3.bf16.msra.mxu1 %v2437_v42  ;;  %2089 = vmatprep.mubr.msk.bf16.mxu1 %vm2270_vm3, %v2268_v10 }
 0x921   :  { %2099 = vmatprep.subr.bf16.mxu1 %v2268_v10 }
 0x922   :  { %v879_v8 = vpop.permute.xlu1 %878 }
 0x923   :  { %2072 = vmatmul.mubr.msk.bf16.vlgmr.msra.gmra.mrb[16].mxu0 %vm396_vm4, %v879_v8 }
 0x924   :  { %2082 = vmatpush3.bf16.msra.mxu0 %v2404_v27  ;;  %2083 = vmatprep.mubr.msk.bf16.mxu0 %vm2270_vm3, %v2268_v10 }
 0x925   :  { %2093 = vmatprep.subr.bf16.mxu0 %v2268_v10 }
 0x9f2   :  { %v990_v9 = vpop.f32.mrb[32].mxu1 }
 0x9f3   :  { %v1001_v13 = vadd.f32 %v990_v9, %v2481_v17  ;;  %v2079_v14 = vpop.f32.mrb[33].mxu1  ;;  %v996_v24 = vadd.f32 %v990_v9, %v2473_v4 }
 0x9f4   :  { %v993_v15 = vpop.f32.mrb[34].mxu1 }
 0x9f5   :  { %1003 = vrot.lane.b32.xlu0 %v1001_v13, %s2272_s5  ;;  %v2080_v16 = vpop.f32.mrb[35].mxu1  ;;  %v997_v25 = vmul.f32 0.5, %v996_v24 }
 0x9f6   :  { %v917_v18 = vpop.f32.mrb[16].mxu0 }
 0x9f7   :  { %v928_v19 = vadd.f32 %v917_v18, %v2484_v21  ;;  %v2073_v20 = vpop.f32.mrb[17].mxu0  ;;  %v923_v26 = vadd.f32 %v917_v18, %v2459_v55  ;;  %2204 = vtanh.f32 %v997_v25 }
 0x9f8   :  { %v920_v22 = vpop.f32.mrb[18].mxu0 }
 0x9f9   :  { %930 = vrot.lane.b32.xlu1 %v928_v19, %s2272_s5  ;;  %v2074_v23 = vpop.f32.mrb[19].mxu0  ;;  %v924_v28 = vmul.f32 0.5, %v923_v26 }
 0x9fb   :  { %2206 = vtanh.f32 %v924_v28 }
 0xa01   :  { %v2205_v29 = vpop.eup %2204 }
 0xa02   :  { %v999_v30 = vmul.f32 0.5, %v2205_v29 }
 0xa04   :  { %v1000_v32 = vadd.f32 0.5, %v999_v30 }
 0xa05   :  { %v2207_v31 = vpop.eup %2206 }
 0xa06   :  { %v926_v33 = vmul.f32 0.5, %v2207_v31  ;;  %v1013_v46 = vsub.f32 1.0, %v1000_v32  ;;  %v1019_v50 = vmul.f32 %v1000_v32, %v2560_v54 }
 0xa08   :  { %v927_v36 = vadd.f32 0.5, %v926_v33 }
 0xa0a   :  { %v940_v61 = vsub.f32 1.0, %v927_v36  ;;  %v946_v12 = vmul.f32 %v927_v36, %v2565_v1 }
 0xa67   :  { %v1004_v34 = vpop.permute.xlu0 %1003 }
 0xa68   :  { %v1006_v35 = vmul.f32 %v1004_v34, %v1000_v32 }
 0xa6a   :  { %1008 = vrot.lane.b32.xlu0 %v1006_v35, %s2269_s3 }
 0xa6b   :  { %v931_v37 = vpop.permute.xlu1 %930 }
 0xa6c   :  { %v933_v38 = vmul.f32 %v931_v37, %v927_v36 }
 0xa6e   :  { %935 = vrot.lane.b32.xlu1 %v933_v38, %s2269_s3 }
 0xadc   :  { %v1009_v39 = vpop.permute.xlu0 %1008 }
 0xadd   :  { %v1011_v40 = vadd.f32 %v1009_v39, %v2473_v4 }
 0xadf   :  { %2208 = vtanh.f32 %v1011_v40 }
 0xae0   :  { %v936_v41 = vpop.permute.xlu1 %935 }
 0xae1   :  { %v938_v43 = vadd.f32 %v936_v41, %v2459_v55 }
 0xae3   :  { %2210 = vtanh.f32 %v938_v43 }
 0xae9   :  { %v2209_v44 = vpop.eup %2208 }
 0xaea   :  { %1015 = vrot.lane.b32.xlu0 %v2209_v44, %s2273_s9 }
 0xaed   :  { %v2211_v45 = vpop.eup %2210 }
 0xaee   :  { %942 = vrot.lane.b32.xlu1 %v2211_v45, %s2273_s9 }
 0xb5c   :  { %v1016_v47 = vpop.permute.xlu0 %1015 }
 0xb5d   :  { %v1018_v51 = vmul.f32 %v1016_v47, %v1013_v46 }
 0xb5f   :  { %v2594_v53 = vadd.f32 %v1019_v50, %v1018_v51 }
 0xb60   :  { %v943_v4 = vpop.permute.xlu1 %942 }
 0xb61   :  { %v945_v0 = vmul.f32 %v943_v4, %v940_v61  ;;  %v1105_v55 = vpack.c.bf16 %v2594_v53, %v2594_v53 }
 0xb63   :  { %v2599_v62 = vadd.f32 %v946_v12, %v945_v0  ;;  %1107 = vrot.lane.b32.xlu0 %v1105_v55, %s2273_s9 }
 0xb65   :  { %v1032_v48 = vpack.c.bf16 %v2599_v62, %v2599_v62 }
 0xb67   :  { %1034 = vrot.lane.b32.xlu1 %v1032_v48, %s2273_s9 }
 0xbd5   :  { %v1108_v59 = vpop.permute.xlu0 %1107 }
 0xbd6   :  { %2090 = vmatmul.mubr.msk.bf16.vlgmr.msra.gmra.mrb[36].mxu1 %vm396_vm4, %v1108_v59 }
 0xbd7   :  { %2100 = vmatpush3.bf16.msra.mxu1 %v2437_v42  ;;  %2101 = vmatprep.mubr.msk.bf16.mxu1 %vm2270_vm3, %v2268_v10 }
 0xbd8   :  { %2111 = vmatprep.subr.bf16.mxu1 %v2268_v10 }
 0xbd9   :  { %v1035_v5 = vpop.permute.xlu1 %1034 }
 0xbda   :  { %2084 = vmatmul.mubr.msk.bf16.vlgmr.msra.gmra.mrb[20].mxu0 %vm396_vm4, %v1035_v5 }
 0xbdb   :  { %2094 = vmatpush3.bf16.msra.mxu0 %v2404_v27  ;;  %2095 = vmatprep.mubr.msk.bf16.mxu0 %vm2270_vm3, %v2268_v10 }
 0xbdc   :  { %2105 = vmatprep.subr.bf16.mxu0 %v2268_v10 }
 0xca9   :  { %v1146_v8 = vpop.f32.mrb[36].mxu1 }
 0xcaa   :  { %v1157_v9 = vadd.f32 %v1146_v8, %v2481_v17  ;;  %v2091_v13 = vpop.f32.mrb[37].mxu1  ;;  %v1152_v23 = vadd.f32 %v1146_v8, %v2461_v56 }
 0xcab   :  { %v1149_v14 = vpop.f32.mrb[38].mxu1 }
 0xcac   :  { %1159 = vrot.lane.b32.xlu0 %v1157_v9, %s2272_s5  ;;  %v2092_v15 = vpop.f32.mrb[39].mxu1  ;;  %v1153_v24 = vmul.f32 0.5, %v1152_v23 }
 0xcad   :  { %v1073_v16 = vpop.f32.mrb[20].mxu0 }
 0xcae   :  { %v1084_v18 = vadd.f32 %v1073_v16, %v2484_v21  ;;  %v2085_v19 = vpop.f32.mrb[21].mxu0  ;;  %v1079_v25 = vadd.f32 %v1073_v16, %v2471_v3  ;;  %2212 = vtanh.f32 %v1153_v24 }
 0xcaf   :  { %v1076_v20 = vpop.f32.mrb[22].mxu0 }
 0xcb0   :  { %1086 = vrot.lane.b32.xlu1 %v1084_v18, %s2272_s5  ;;  %v2086_v22 = vpop.f32.mrb[23].mxu0  ;;  %v1080_v26 = vmul.f32 0.5, %v1079_v25 }
 0xcb2   :  { %2214 = vtanh.f32 %v1080_v26 }
 0xcb8   :  { %v2213_v28 = vpop.eup %2212 }
 0xcb9   :  { %v1155_v29 = vmul.f32 0.5, %v2213_v28 }
 0xcbb   :  { %v1156_v31 = vadd.f32 0.5, %v1155_v29 }
 0xcbc   :  { %v2215_v30 = vpop.eup %2214 }
 0xcbd   :  { %v1082_v32 = vmul.f32 0.5, %v2215_v30  ;;  %v1169_v45 = vsub.f32 1.0, %v1156_v31  ;;  %v1175_v47 = vmul.f32 %v1156_v31, %v2594_v53 }
 0xcbf   :  { %v1083_v35 = vadd.f32 0.5, %v1082_v32 }
 0xcc1   :  { %v1096_v61 = vsub.f32 1.0, %v1083_v35  ;;  %v1102_v4 = vmul.f32 %v1083_v35, %v2599_v62 }
 0xd1e   :  { %v1160_v33 = vpop.permute.xlu0 %1159 }
 0xd1f   :  { %v1162_v34 = vmul.f32 %v1160_v33, %v1156_v31 }
 0xd21   :  { %1164 = vrot.lane.b32.xlu0 %v1162_v34, %s2269_s3 }
 0xd22   :  { %v1087_v36 = vpop.permute.xlu1 %1086 }
 0xd23   :  { %v1089_v37 = vmul.f32 %v1087_v36, %v1083_v35 }
 0xd25   :  { %1091 = vrot.lane.b32.xlu1 %v1089_v37, %s2269_s3 }
 0xd93   :  { %v1165_v38 = vpop.permute.xlu0 %1164 }
 0xd94   :  { %v1167_v39 = vadd.f32 %v1165_v38, %v2461_v56 }
 0xd96   :  { %2216 = vtanh.f32 %v1167_v39 }
 0xd97   :  { %v1092_v40 = vpop.permute.xlu1 %1091 }
 0xd98   :  { %v1094_v41 = vadd.f32 %v1092_v40, %v2471_v3 }
 0xd9a   :  { %2218 = vtanh.f32 %v1094_v41 }
 0xda0   :  { %v2217_v43 = vpop.eup %2216 }
 0xda1   :  { %1171 = vrot.lane.b32.xlu0 %v2217_v43, %s2273_s9 }
 0xda4   :  { %v2219_v44 = vpop.eup %2218 }
 0xda5   :  { %1098 = vrot.lane.b32.xlu1 %v2219_v44, %s2273_s9 }
 0xe13   :  { %v1172_v46 = vpop.permute.xlu0 %1171 }
 0xe14   :  { %v1174_v50 = vmul.f32 %v1172_v46, %v1169_v45 }
 0xe16   :  { %v2628_v51 = vadd.f32 %v1175_v47, %v1174_v50 }
 0xe17   :  { %v1099_v56 = vpop.permute.xlu1 %1098 }
 0xe18   :  { %v1101_v12 = vmul.f32 %v1099_v56, %v1096_v61  ;;  %v1261_v3 = vpack.c.bf16 %v2628_v51, %v2628_v51 }
 0xe1a   :  { %v2633_v0 = vadd.f32 %v1102_v4, %v1101_v12  ;;  %1263 = vrot.lane.b32.xlu0 %v1261_v3, %s2273_s9 }
 0xe1c   :  { %v1188_v55 = vpack.c.bf16 %v2633_v0, %v2633_v0 }
 0xe1e   :  { %1190 = vrot.lane.b32.xlu1 %v1188_v55, %s2273_s9 }
 0xe8c   :  { %v1264_v48 = vpop.permute.xlu0 %1263 }
 0xe8d   :  { %2102 = vmatmul.mubr.msk.bf16.vlgmr.msra.gmra.mrb[40].mxu1 %vm396_vm4, %v1264_v48 }
 0xe8e   :  { %2112 = vmatpush3.bf16.msra.mxu1 %v2437_v42  ;;  %2113 = vmatprep.mubr.msk.bf16.mxu1 %vm2270_vm3, %v2268_v10 }
 0xe8f   :  { %2123 = vmatprep.subr.bf16.mxu1 %v2268_v10 }
 0xe90   :  { %v1191_v59 = vpop.permute.xlu1 %1190 }
 0xe91   :  { %2096 = vmatmul.mubr.msk.bf16.vlgmr.msra.gmra.mrb[24].mxu0 %vm396_vm4, %v1191_v59 }
 0xe92   :  { %2106 = vmatpush3.bf16.msra.mxu0 %v2404_v27  ;;  %2107 = vmatprep.mubr.msk.bf16.mxu0 %vm2270_vm3, %v2268_v10 }
 0xe93   :  { %2117 = vmatprep.subr.bf16.mxu0 %v2268_v10 }
 0xf60   :  { %v1302_v5 = vpop.f32.mrb[40].mxu1 }
 0xf61   :  { %v1313_v8 = vadd.f32 %v1302_v5, %v2481_v17  ;;  %v2103_v9 = vpop.f32.mrb[41].mxu1  ;;  %v1308_v22 = vadd.f32 %v1302_v5, %v2455_v49 }
 0xf62   :  { %v1305_v13 = vpop.f32.mrb[42].mxu1 }
 0xf63   :  { %1315 = vrot.lane.b32.xlu0 %v1313_v8, %s2272_s5  ;;  %v2104_v14 = vpop.f32.mrb[43].mxu1  ;;  %v1309_v23 = vmul.f32 0.5, %v1308_v22 }
 0xf64   :  { %v1229_v15 = vpop.f32.mrb[24].mxu0 }
 0xf65   :  { %v1240_v16 = vadd.f32 %v1229_v15, %v2484_v21  ;;  %v2097_v18 = vpop.f32.mrb[25].mxu0  ;;  %v1235_v24 = vadd.f32 %v1229_v15, %v2477_v11  ;;  %2220 = vtanh.f32 %v1309_v23 }
 0xf66   :  { %v1232_v19 = vpop.f32.mrb[26].mxu0 }
 0xf67   :  { %1242 = vrot.lane.b32.xlu1 %v1240_v16, %s2272_s5  ;;  %v2098_v20 = vpop.f32.mrb[27].mxu0  ;;  %v1236_v25 = vmul.f32 0.5, %v1235_v24 }
 0xf69   :  { %2222 = vtanh.f32 %v1236_v25 }
 0xf6f   :  { %v2221_v26 = vpop.eup %2220 }
 0xf70   :  { %v1311_v28 = vmul.f32 0.5, %v2221_v26 }
 0xf72   :  { %v1312_v30 = vadd.f32 0.5, %v1311_v28 }
 0xf73   :  { %v2223_v29 = vpop.eup %2222 }
 0xf74   :  { %v1238_v31 = vmul.f32 0.5, %v2223_v29  ;;  %v1325_v44 = vsub.f32 1.0, %v1312_v30  ;;  %v1331_v46 = vmul.f32 %v1312_v30, %v2628_v51 }
 0xf76   :  { %v1239_v34 = vadd.f32 0.5, %v1238_v31 }
 0xf78   :  { %v1252_v61 = vsub.f32 1.0, %v1239_v34  ;;  %v1258_v56 = vmul.f32 %v1239_v34, %v2633_v0 }
 0xfd5   :  { %v1316_v32 = vpop.permute.xlu0 %1315 }
 0xfd6   :  { %v1318_v33 = vmul.f32 %v1316_v32, %v1312_v30 }
 0xfd8   :  { %1320 = vrot.lane.b32.xlu0 %v1318_v33, %s2269_s3 }
 0xfd9   :  { %v1243_v35 = vpop.permute.xlu1 %1242 }
 0xfda   :  { %v1245_v36 = vmul.f32 %v1243_v35, %v1239_v34 }
 0xfdc   :  { %1247 = vrot.lane.b32.xlu1 %v1245_v36, %s2269_s3 }
0x104a   :  { %v1321_v37 = vpop.permute.xlu0 %1320 }
0x104b   :  { %v1323_v38 = vadd.f32 %v1321_v37, %v2455_v49 }
0x104d   :  { %2224 = vtanh.f32 %v1323_v38 }
0x104e   :  { %v1248_v39 = vpop.permute.xlu1 %1247 }
0x104f   :  { %v1250_v40 = vadd.f32 %v1248_v39, %v2477_v11 }
0x1051   :  { %2226 = vtanh.f32 %v1250_v40 }
0x1057   :  { %v2225_v41 = vpop.eup %2224 }
0x1058   :  { %1327 = vrot.lane.b32.xlu0 %v2225_v41, %s2273_s9 }
0x105b   :  { %v2227_v43 = vpop.eup %2226 }
0x105c   :  { %1254 = vrot.lane.b32.xlu1 %v2227_v43, %s2273_s9 }
0x10ca   :  { %v1328_v45 = vpop.permute.xlu0 %1327 }
0x10cb   :  { %v1330_v47 = vmul.f32 %v1328_v45, %v1325_v44 }
0x10cd   :  { %v2662_v50 = vadd.f32 %v1331_v46, %v1330_v47 }
0x10ce   :  { %v1255_v49 = vpop.permute.xlu1 %1254 }
0x10cf   :  { %v1257_v4 = vmul.f32 %v1255_v49, %v1252_v61  ;;  %v1417_v11 = vpack.c.bf16 %v2662_v50, %v2662_v50 }
0x10d1   :  { %v2667_v12 = vadd.f32 %v1258_v56, %v1257_v4  ;;  %1419 = vrot.lane.b32.xlu0 %v1417_v11, %s2273_s9 }
0x10d3   :  { %v1344_v3 = vpack.c.bf16 %v2667_v12, %v2667_v12 }
0x10d5   :  { %1346 = vrot.lane.b32.xlu1 %v1344_v3, %s2273_s9 }
0x1143   :  { %v1420_v55 = vpop.permute.xlu0 %1419 }
0x1144   :  { %2114 = vmatmul.mubr.msk.bf16.vlgmr.msra.gmra.mrb[44].mxu1 %vm396_vm4, %v1420_v55 }
0x1145   :  { %2124 = vmatpush3.bf16.msra.mxu1 %v2437_v42  ;;  %2125 = vmatprep.mubr.msk.bf16.mxu1 %vm2270_vm3, %v2268_v10 }
0x1147   :  { %v1347_v48 = vpop.permute.xlu1 %1346 }
0x1148   :  { %2108 = vmatmul.mubr.msk.bf16.vlgmr.msra.gmra.mrb[28].mxu0 %vm396_vm4, %v1347_v48 }
0x1149   :  { %2118 = vmatpush3.bf16.msra.mxu0 %v2404_v27  ;;  %2119 = vmatprep.mubr.msk.bf16.mxu0 %vm2270_vm3, %v2268_v10 }
0x1217   :  { %v1458_v59 = vpop.f32.mrb[44].mxu1 }
0x1218   :  { %v1469_v5 = vadd.f32 %v1458_v59, %v2481_v17  ;;  %v2115_v8 = vpop.f32.mrb[45].mxu1  ;;  %v1464_v27 = vadd.f32 %v1458_v59, %v2465_v60 }
0x1219   :  { %v1461_v9 = vpop.f32.mrb[46].mxu1 }
0x121a   :  { %1471 = vrot.lane.b32.xlu0 %v1469_v5, %s2272_s5  ;;  %v2116_v13 = vpop.f32.mrb[47].mxu1  ;;  %v1465_v19 = vmul.f32 0.5, %v1464_v27 }
0x121b   :  { %v1385_v42 = vpop.f32.mrb[28].mxu0 }
0x121c   :  { %v1396_v14 = vadd.f32 %v1385_v42, %v2484_v21  ;;  %v2109_v15 = vpop.f32.mrb[29].mxu0  ;;  %v1391_v10 = vadd.f32 %v1385_v42, %v2467_v63  ;;  %2228 = vtanh.f32 %v1465_v19 }
0x121d   :  { %v1388_v16 = vpop.f32.mrb[30].mxu0 }
0x121e   :  { %1398 = vrot.lane.b32.xlu1 %v1396_v14, %s2272_s5  ;;  %v2110_v18 = vpop.f32.mrb[31].mxu0  ;;  %v1392_v20 = vmul.f32 0.5, %v1391_v10 }
0x1220   :  { %2230 = vtanh.f32 %v1392_v20 }
0x1226   :  { %v2229_v22 = vpop.eup %2228 }
0x1227   :  { %v1467_v23 = vmul.f32 0.5, %v2229_v22 }
0x1229   :  { %v1468_v25 = vadd.f32 0.5, %v1467_v23 }
0x122a   :  { %v2231_v24 = vpop.eup %2230 }
0x122b   :  { %v1394_v26 = vmul.f32 0.5, %v2231_v24  ;;  %v1481_v39 = vsub.f32 1.0, %v1468_v25  ;;  %v1487_v41 = vmul.f32 %v1468_v25, %v2662_v50 }
0x122d   :  { %v1395_v30 = vadd.f32 0.5, %v1394_v26 }
0x122f   :  { %v1408_v45 = vsub.f32 1.0, %v1395_v30  ;;  %v1414_v46 = vmul.f32 %v1395_v30, %v2667_v12 }
0x128c   :  { %v1472_v28 = vpop.permute.xlu0 %1471 }
0x128d   :  { %v1474_v29 = vmul.f32 %v1472_v28, %v1468_v25 }
0x128f   :  { %1476 = vrot.lane.b32.xlu0 %v1474_v29, %s2269_s3 }
0x1290   :  { %v1399_v31 = vpop.permute.xlu1 %1398 }
0x1291   :  { %v1401_v32 = vmul.f32 %v1399_v31, %v1395_v30 }
0x1293   :  { %1403 = vrot.lane.b32.xlu1 %v1401_v32, %s2269_s3 }
0x1301   :  { %v1477_v33 = vpop.permute.xlu0 %1476 }
0x1302   :  { %v1479_v34 = vadd.f32 %v1477_v33, %v2465_v60 }
0x1304   :  { %2232 = vtanh.f32 %v1479_v34 }
0x1305   :  { %v1404_v35 = vpop.permute.xlu1 %1403 }
0x1306   :  { %v1406_v36 = vadd.f32 %v1404_v35, %v2467_v63 }
0x1308   :  { %2234 = vtanh.f32 %v1406_v36 }
0x130e   :  { %v2233_v37 = vpop.eup %2232 }
0x130f   :  { %1483 = vrot.lane.b32.xlu0 %v2233_v37, %s2273_s9 }
0x1312   :  { %v2235_v38 = vpop.eup %2234 }
0x1313   :  { %1410 = vrot.lane.b32.xlu1 %v2235_v38, %s2273_s9 }
0x1381   :  { %v1484_v40 = vpop.permute.xlu0 %1483 }
0x1382   :  { %v1486_v43 = vmul.f32 %v1484_v40, %v1481_v39 }
0x1384   :  { %v2694_v44 = vadd.f32 %v1487_v41, %v1486_v43 }
0x1385   :  { %v1411_v60 = vpop.permute.xlu1 %1410 }
0x1386   :  { %v1413_v47 = vmul.f32 %v1411_v60, %v1408_v45  ;;  %v1573_v63 = vpack.c.bf16 %v2694_v44, %v2694_v44 }
0x1388   :  { %v2699_v61 = vadd.f32 %v1414_v46, %v1413_v47  ;;  %1575 = vrot.lane.b32.xlu0 %v1573_v63, %s2273_s9 }
0x138a   :  { %v1500_v49 = vpack.c.bf16 %v2699_v61, %v2699_v61 }
0x138c   :  { %1502 = vrot.lane.b32.xlu1 %v1500_v49, %s2273_s9 }
0x13fa   :  { %v1576_v56 = vpop.permute.xlu0 %1575 }
0x13fb   :  { %2126 = vmatmul.mubr.msk.bf16.vlgmr.msra.gmra.mrb[48].mxu1 %vm396_vm4, %v1576_v56 }
0x13fe   :  { %v1503_v4 = vpop.permute.xlu1 %1502 }
0x13ff   :  { %2120 = vmatmul.mubr.msk.bf16.vlgmr.msra.gmra.mrb[32].mxu0 %vm396_vm4, %v1503_v4 }
0x14ce   :  { %v1614_v11 = vpop.f32.mrb[48].mxu1 }
0x14cf   :  { %v1625_v3 = vadd.f32 %v1614_v11, %v2481_v17  ;;  %v2127_v55 = vpop.f32.mrb[49].mxu1  ;;  %v1620_v14 = vadd.f32 %v1614_v11, %v2457_v52 }
0x14d0   :  { %v1617_v48 = vpop.f32.mrb[50].mxu1 }
0x14d1   :  { %1627 = vrot.lane.b32.xlu0 %v1625_v3, %s2272_s5  ;;  %v2128_v59 = vpop.f32.mrb[51].mxu1  ;;  %v1621_v15 = vmul.f32 0.5, %v1620_v14 }
0x14d2   :  { %v1541_v5 = vpop.f32.mrb[32].mxu0 }
0x14d3   :  { %v1552_v8 = vadd.f32 %v1541_v5, %v2484_v21  ;;  %v2121_v9 = vpop.f32.mrb[33].mxu0  ;;  %v1547_v16 = vadd.f32 %v1541_v5, %v2475_v7  ;;  %2236 = vtanh.f32 %v1621_v15 }
0x14d4   :  { %v1544_v13 = vpop.f32.mrb[34].mxu0 }
0x14d5   :  { %1554 = vrot.lane.b32.xlu1 %v1552_v8, %s2272_s5  ;;  %v2122_v42 = vpop.f32.mrb[35].mxu0  ;;  %v1548_v17 = vmul.f32 0.5, %v1547_v16 }
0x14d7   :  { %2238 = vtanh.f32 %v1548_v17 }
0x14dd   :  { %v2237_v18 = vpop.eup %2236 }
0x14de   :  { %v1623_v27 = vmul.f32 0.5, %v2237_v18 }
0x14e0   :  { %v1624_v10 = vadd.f32 0.5, %v1623_v27 }
0x14e1   :  { %v2239_v19 = vpop.eup %2238 }
0x14e2   :  { %v1550_v20 = vmul.f32 0.5, %v2239_v19 }
0x14e4   :  { %v1551_v23 = vadd.f32 0.5, %v1550_v20  ;;  %v1939_v20 = vld [vmem:[%s2809_s13] ss:$0 sm:$0xff]  ;;  %s2244_s13 = scalar_lea.vmem %s1878_s10, 1024 }
0x14e5   :  { %p2245_p0 = scmp.ne.s32.totalorder %s1878_s10, %s2244_s13  ;;  %p2250_p2 = scmp.lt.s32.totalorder %s2244_s13, %s2244_s13 }
0x14e6   :  { %v1564_v38 = vsub.f32 1.0, %v1551_v23  ;;  %v1570_v40 = vmul.f32 %v1551_v23, %v2699_v61 }
0x14e7   :  { %p2251_p3 = por %p2250_p2, %p2249_p1 }
0x14e9   :  { %p2252_p4 = pnand %p2251_p3, %p2245_p0 }
0x1543   :  { %v1628_v22 = vpop.permute.xlu0 %1627 }
0x1544   :  { %v1630_v21 = vmul.f32 %v1628_v22, %v1624_v10 }
0x1546   :  { %1632 = vrot.lane.b32.xlu0 %v1630_v21, %s2269_s3 }
0x1547   :  { %v1555_v24 = vpop.permute.xlu1 %1554 }
0x1548   :  { %v1557_v25 = vmul.f32 %v1555_v24, %v1551_v23 }
0x154a   :  { %1559 = vrot.lane.b32.xlu1 %v1557_v25, %s2269_s3 }
0x15b8   :  { %v1633_v26 = vpop.permute.xlu0 %1632 }
0x15b9   :  { %v1635_v28 = vadd.f32 %v1633_v26, %v2457_v52  ;;  %v2178_v52 = vld [vmem:[%s2808_s12] sm:$0xff]  }
0x15ba   :  { %2129 = vmatprep.subr.bf16.mxu0 %v2178_v52 }
0x15bb   :  { %2240 = vtanh.f32 %v1635_v28  ;;  %2130 = vmatpush3.bf16.msra.mxu0 %v2178_v52 }
0x15bc   :  { %v1560_v29 = vpop.permute.xlu1 %1559 }
0x15bd   :  { %v1562_v30 = vadd.f32 %v1560_v29, %v2475_v7  ;;  %v1637_v7 = vsub.f32 1.0, %v1624_v10 }
0x15bf   :  { %2242 = vtanh.f32 %v1562_v30 }
0x15c5   :  { %v2241_v31 = vpop.eup %2240 }
0x15c6   :  { %1639 = vrot.lane.b32.xlu0 %v2241_v31, %s2273_s9 }
0x15c9   :  { %v2243_v32 = vpop.eup %2242 }
0x15ca   :  { %1495 = vrot.lane.b32.xlu0 %v2694_v44, %s2273_s9  ;;  %1566 = vrot.lane.b32.xlu1 %v2243_v32, %s2273_s9 }
0x15ce   :  { %1183 = vrot.lane.b32.xlu0 %v2628_v51, %s2273_s9 }
0x15d2   :  { %871 = vrot.lane.b32.xlu0 %v2560_v54, %s2273_s9  ;;  %v1643_v54 = vmul.f32 %v1624_v10, %v2694_v44 }
0x15d6   :  { %559 = vrot.lane.b32.xlu0 %v2493_v58, %s2273_s9 }
0x15da   :  { %554 = vrot.lane.b32.xlu0 %v2497_v6, %s2273_s9 }
0x15de   :  { %866 = vrot.lane.b32.xlu0 %v2565_v1, %s2273_s9  ;;  %v2179_v1 = vld [vmem:[%s2807_s11] sm:$0xff]  }
0x15df   :  { %2139 = vmatprep.subr.bf16.mxu0 %v2179_v1 }
0x15e2   :  { %1178 = vrot.lane.b32.xlu0 %v2633_v0, %s2273_s9 }
0x15e6   :  { %1490 = vrot.lane.b32.xlu0 %v2699_v61, %s2273_s9 }
0x1638   :  { %v1640_v58 = vpop.permute.xlu0 %1639 }
0x1639   :  { %v1642_v6 = vmul.f32 %v1640_v58, %v1637_v7 }
0x163b   :  { %v1644_v51 = vadd.f32 %v1643_v54, %v1642_v6 }
0x163c   :  { %v1496_v33 = vpop.permute.xlu0 %1495  ;;  %v1567_v37 = vpop.permute.xlu1 %1566 }
0x163d   :  { %1498 = vst.msk [vmem:[#allocation5 + $0x8] sm:$0xff] %vm396_vm4, %v1496_v33  ;;  %1651 = vrot.lane.b32.xlu1 %v1644_v51, %s2273_s9 }
0x1640   :  { %v1184_v0 = vpop.permute.xlu0 %1183 }
0x1641   :  { %1186 = vst.msk [vmem:[#allocation5 + $0x18] sm:$0xff] %vm396_vm4, %v1184_v0  ;;  %1339 = vrot.lane.b32.xlu1 %v2662_v50, %s2273_s9 }
0x1644   :  { %v872_v34 = vpop.permute.xlu0 %871  ;;  %v1670_v45 = vld [vmem:[#allocation5 + $0x8] sm:$0xff] }
0x1645   :  { %874 = vst.msk [vmem:[#allocation5 + $0x28] sm:$0xff] %vm396_vm4, %v872_v34  ;;  %1027 = vrot.lane.b32.xlu1 %v2594_v53, %s2273_s9  ;;  %v1569_v53 = vmul.f32 %v1567_v37, %v1564_v38 }
0x1648   :  { %v560_v35 = vpop.permute.xlu0 %559  ;;  %v1672_v47 = vld [vmem:[#allocation5 + $0x18] sm:$0xff] }
0x1649   :  { %562 = vst.msk [vmem:[#allocation5 + $0x38] sm:$0xff] %vm396_vm4, %v560_v35  ;;  %715 = vrot.lane.b32.xlu1 %v2526_v57, %s2273_s9  ;;  %v1571_v57 = vadd.f32 %v1570_v40, %v1569_v53 }
0x164c   :  { %v555_v36 = vpop.permute.xlu0 %554  ;;  %v1674_v56 = vld [vmem:[#allocation5 + $0x28] sm:$0xff] }
0x164d   :  { %557 = vst.msk [vmem:[#allocation4] sm:$0xff] %vm396_vm4, %v555_v36  ;;  %710 = vrot.lane.b32.xlu1 %v2531_v2, %s2273_s9 }
0x1650   :  { %v867_v50 = vpop.permute.xlu0 %866  ;;  %v1676_v55 = vld [vmem:[#allocation5 + $0x38] sm:$0xff] }
0x1651   :  { %869 = vst.msk [vmem:[#allocation4 + $0x10] sm:$0xff] %vm396_vm4, %v867_v50  ;;  %1022 = vrot.lane.b32.xlu1 %v2599_v62, %s2273_s9 }
0x1654   :  { %v1179_v39 = vpop.permute.xlu0 %1178  ;;  %v1655_v5 = vld [vmem:[#allocation4] sm:$0xff] }
0x1655   :  { %1181 = vst.msk [vmem:[#allocation4 + $0x20] sm:$0xff] %vm396_vm4, %v1179_v39  ;;  %1334 = vrot.lane.b32.xlu1 %v2667_v12, %s2273_s9 }
0x1658   :  { %v1491_v41 = vpop.permute.xlu0 %1490  ;;  %v1657_v42 = vld [vmem:[#allocation4 + $0x10] sm:$0xff] }
0x1659   :  { %1493 = vst.msk [vmem:[#allocation4 + $0x30] sm:$0xff] %vm396_vm4, %v1491_v41  ;;  %1646 = vrot.lane.b32.xlu1 %v1571_v57, %s2273_s9 }
0x165c   :  { %v1659_v16 = vld [vmem:[#allocation4 + $0x20] sm:$0xff] }
0x1660   :  { %v1661_v27 = vld [vmem:[#allocation4 + $0x30] sm:$0xff] }
0x16af   :  { %v1652_v2 = vpop.permute.xlu1 %1651 }
0x16b0   :  { %1654 = vst.msk [vmem:[#allocation5] sm:$0xff] %vm396_vm4, %v1652_v2 }
0x16b3   :  { %v1340_v43 = vpop.permute.xlu1 %1339 }
0x16b4   :  { %1342 = vst.msk [vmem:[#allocation5 + $0x10] sm:$0xff] %vm396_vm4, %v1340_v43 }
0x16b7   :  { %v1028_v62 = vpop.permute.xlu1 %1027  ;;  %v1669_v44 = vld [vmem:[#allocation5] sm:$0xff] }
0x16b8   :  { %1030 = vst.msk [vmem:[#allocation5 + $0x20] sm:$0xff] %vm396_vm4, %v1028_v62  ;;  %v1677_v60 = vpack.c.bf16 %v1670_v45, %v1669_v44 }
0x16ba   :  { %2131 = vmatprep.mubr.msk.bf16.mxu0 %vm396_vm4, %v1677_v60 }
0x16bb   :  { %v716_v12 = vpop.permute.xlu1 %715  ;;  %v1671_v46 = vld [vmem:[#allocation5 + $0x10] sm:$0xff] }
0x16bc   :  { %718 = vst.msk [vmem:[#allocation5 + $0x30] sm:$0xff] %vm396_vm4, %v716_v12  ;;  %v1678_v63 = vpack.c.bf16 %v1672_v47, %v1671_v46 }
0x16be   :  { %2132 = vmatmul.mubr.msk.bf16.vlgmr.msra.gmra.mrb[36].mxu0 %vm396_vm4, %v1678_v63 }
0x16bf   :  { %2140 = vmatpush3.bf16.msra.mxu0 %v2179_v1  ;;  %v711_v61 = vpop.permute.xlu1 %710  ;;  %v1673_v49 = vld [vmem:[#allocation5 + $0x20] sm:$0xff] }
0x16c0   :  { %713 = vst.msk [vmem:[#allocation4 + $0x8] sm:$0xff] %vm396_vm4, %v711_v61  ;;  %v1679_v4 = vpack.c.bf16 %v1674_v56, %v1673_v49 }
0x16c2   :  { %2135 = vmatprep.mubr.msk.bf16.mxu0 %vm396_vm4, %v1679_v4 }
0x16c3   :  { %v1023_v11 = vpop.permute.xlu1 %1022  ;;  %v1675_v3 = vld [vmem:[#allocation5 + $0x30] sm:$0xff] }
0x16c4   :  { %1025 = vst.msk [vmem:[#allocation4 + $0x18] sm:$0xff] %vm396_vm4, %v1023_v11  ;;  %v1680_v48 = vpack.c.bf16 %v1676_v55, %v1675_v3 }
0x16c6   :  { %2136 = vmatmul.mubr.msk.bf16.gmra.mrb[40].mxu0 %vm396_vm4, %v1680_v48 }
0x16c7   :  { %v1335_v59 = vpop.permute.xlu1 %1334  ;;  %v1656_v8 = vld [vmem:[#allocation4 + $0x8] sm:$0xff] }
0x16c8   :  { %1337 = vst.msk [vmem:[#allocation4 + $0x28] sm:$0xff] %vm396_vm4, %v1335_v59  ;;  %v1663_v9 = vpack.c.bf16 %v1656_v8, %v1655_v5 }
0x16ca   :  { %2141 = vmatprep.mubr.msk.bf16.mxu0 %vm396_vm4, %v1663_v9 }
0x16cb   :  { %v1647_v13 = vpop.permute.xlu1 %1646  ;;  %v1658_v14 = vld [vmem:[#allocation4 + $0x18] sm:$0xff] }
0x16cc   :  { %1649 = vst.msk [vmem:[#allocation4 + $0x38] sm:$0xff] %vm396_vm4, %v1647_v13  ;;  %v1664_v15 = vpack.c.bf16 %v1658_v14, %v1657_v42 }
0x16ce   :  { %2142 = vmatmul.mubr.msk.bf16.vlgmr.msra.gmra.mrb[36].mxu0 %vm396_vm4, %v1664_v15 }
0x16cf   :  { %v1660_v17 = vld [vmem:[#allocation4 + $0x28] sm:$0xff] }
0x16d0   :  { %v1665_v18 = vpack.c.bf16 %v1660_v17, %v1659_v16 }
0x16d2   :  { %2145 = vmatprep.mubr.msk.bf16.mxu0 %vm396_vm4, %v1665_v18 }
0x16d3   :  { %v1662_v19 = vld [vmem:[#allocation4 + $0x38] sm:$0xff] }
0x16d4   :  { %v1666_v10 = vpack.c.bf16 %v1662_v19, %v1661_v27 }
0x16d6   :  { %2146 = vmatmul.mubr.msk.bf16.gmra.mrb[40].mxu0 %vm396_vm4, %v1666_v10 }
0x17a1   :  { %v2143_v22 = vpop.f32.mrb[36].mxu0 }
0x17a2   :  { %v1858_v21 = vadd.f32 %v2143_v22, %v1939_v20  ;;  %v1818_v23 = vpop.f32.mrb[37].mxu0 }
0x17a3   :  { %v1856_v24 = vadd.f32 %v1939_v20, %v1818_v23  ;;  %v2144_v25 = vpop.f32.mrb[38].mxu0 }
0x17a4   :  { %1866 = vst [vmem:[#allocation6 + $0x10] sm:$0xff] %v1858_v21  ;;  %v1859_v26 = vadd.f32 %v2144_v25, %v1939_v20  ;;  %v1821_v28 = vpop.f32.mrb[39].mxu0 }
0x17a5   :  { %1864 = vst [vmem:[#allocation6] sm:$0xff] %v1856_v24  ;;  %v1857_v29 = vadd.f32 %v1939_v20, %v1821_v28 }
0x17a6   :  { %1867 = vst [vmem:[#allocation6 + $0x18] sm:$0xff] %v1859_v26 }
0x17a7   :  { %1865 = vst [vmem:[#allocation6 + $0x8] sm:$0xff] %v1857_v29 }
0x17a9   :  { %v2147_v30 = vpop.f32.mrb[40].mxu0 }
0x17aa   :  { %v1862_v31 = vadd.f32 %v2147_v30, %v1939_v20  ;;  %v1834_v32 = vpop.f32.mrb[41].mxu0 }
0x17ab   :  { %v1860_v52 = vadd.f32 %v1939_v20, %v1834_v32  ;;  %v2148_v7 = vpop.f32.mrb[42].mxu0 }
0x17ac   :  { %1870 = vst [vmem:[#allocation6 + $0x30] sm:$0xff] %v1862_v31  ;;  %v1863_v58 = vadd.f32 %v2148_v7, %v1939_v20  ;;  %v1837_v54 = vpop.f32.mrb[43].mxu0 }
0x17ad   :  { %1868 = vst [vmem:[#allocation6 + $0x20] sm:$0xff] %v1860_v52  ;;  %v1861_v6 = vadd.f32 %v1939_v20, %v1837_v54 }
0x17ae   :  { %1871 = vst [vmem:[#allocation6 + $0x38] sm:$0xff] %v1863_v58 }
0x17af   :  { %1869 = vst [vmem:[#allocation6 + $0x28] sm:$0xff] %v1861_v6 }
0x17b0   :  { %2255 = shalt.err (!%p2252_p4)
}
0x17b1   :  { %s2256_s21 = scalar_lea.hbm %s2810_s14, 1024 }
0x17b2   :  { %p2257_p5 = scmp.ne.s32.totalorder %s2810_s14, %s2256_s21  ;;  %p2260_p6 = scmp.lt.u32.totalorder %s2256_s21, %s2810_s14 }
0x17b4   :  { %p2262_p7 = pnand %p2260_p6, %p2257_p5 }
0x17b6   :  { %2265 = shalt.err (!%p2262_p7)
}
0x17b7   :  { %s2275_s25 = smov 128   ;;  %s2276_s26 = smov 8  }
0x17b8   :  { %1883 = dma.vmem_to_hbm [thread:$0]  %s1878_s10, 1024, %s2810_s14, [#allocation7], %s2275_s25, %s2275_s25, %s2276_s26  }
0x17b9   :  { %2266 = dma.done.wait [#allocation7], 1024  }
0x17ba   :  { %2267 = vsyncadd [#allocation7], 4294966272 }
0x17bb   :  { %1887 = vsyncpa [#allocation7], 1 }

</bundles_post_ra>
